<compile_context>
chip_gen: v6e
topology: v6e:2x2x1
jax: 0.10.0
libtpu: 0.0.40
codegen_flags: <defaults>
</compile_context>

<pallas_src>
import functools

import jax
import jax.numpy as jnp
from jax.experimental import pallas as pl
from jax.experimental.pallas import tpu as pltpu


def _supcon_kernel(
    rcls_ref,   # [blk, 1]  int32 encoded class ids of the anchor (row) block
    ccls_ref,   # [1, blk]  int32 encoded class ids of the contrast (col) block
    npos_ref,   # [blk, 1]  f32   number of positives per anchor (precomputed)
    a_ref,      # [blk, D]  bf16  anchor features, 1/T already folded in
    bt_ref,     # [D, blk]  bf16  contrast features, pre-transposed
    out_ref,    # [blk, 1]  f32   per-anchor loss (written on last column step)
    m_ref,      # [blk, 1]  f32   scratch: running max of sim (incl. diagonal)
    d_ref,      # [blk, 1]  f32   scratch: running sum exp(sim - m), diag excluded
    sp_ref,     # [blk, 1]  f32   scratch: running sum of sim over positives
    *,
    out_scale,
):
    i = pl.program_id(0)
    j = pl.program_id(1)
    nj = pl.num_programs(1)

    @pl.when(j == 0)
    def _():
        m_ref[...] = jnp.full_like(m_ref, -jnp.inf)
        d_ref[...] = jnp.zeros_like(d_ref)
        sp_ref[...] = jnp.zeros_like(sp_ref)

    # bf16 x bf16 -> f32 MXU matmul; the 1/temperature scale rides in a_ref.
    sim = jax.lax.dot_general(
        a_ref[...], bt_ref[...],
        (((1,), (0,)), ((), ())),
        preferred_element_type=jnp.float32,
    )                                                           # [blk, blk] f32

    # Online softmax.  The running max includes the diagonal (like the PyTorch
    # forward); the shift cancels exactly in log_prob.
    m_prev = m_ref[...]
    m_new = jnp.maximum(m_prev, jnp.max(sim, axis=1, keepdims=True))   # [blk,1]
    alpha = jnp.exp(m_prev - m_new)
    p = jnp.exp(sim - m_new)                                            # [blk,blk]
    m_ref[...] = m_new

    eq = rcls_ref[...] == ccls_ref[...]                                 # [blk,blk]

    # Off-diagonal tiles: plain masked accumulation, no diagonal work at all.
    @pl.when(i != j)
    def _():
        d_ref[...] = alpha * d_ref[...] + jnp.sum(p, axis=1, keepdims=True)
        sp_ref[...] = sp_ref[...] + jnp.sum(
            jnp.where(eq, sim, 0.0), axis=1, keepdims=True)

    # Diagonal tiles (square tiles -> global diagonal == local main diagonal):
    # exclude the self-contrast term directly in the masked sums (exact, no
    # add-then-subtract cancellation).
    @pl.when(i == j)
    def _():
        blk = sim.shape[0]
        not_eye = (
            jax.lax.broadcasted_iota(jnp.int32, (blk, blk), 0)
            != jax.lax.broadcasted_iota(jnp.int32, (blk, blk), 1)
        )
        d_ref[...] = alpha * d_ref[...] + jnp.sum(
            jnp.where(not_eye, p, 0.0), axis=1, keepdims=True)
        sp_ref[...] = sp_ref[...] + jnp.sum(
            jnp.where(jnp.logical_and(eq, not_eye), sim, 0.0),
            axis=1, keepdims=True)

    @pl.when(j == nj - 1)
    def _():
        # sum_pos(log_prob) = sum_pos(sim) - n_pos * (m + log(sum_{k!=i} exp(sim_k - m)))
        npos = npos_ref[...]
        log_denom = m_ref[...] + jnp.log(d_ref[...])
        # NOTE: like the PyTorch original, zero positives would divide by zero;
        # padded rows are given npos=1 and discarded in the wrapper.
        out_ref[...] = out_scale * (sp_ref[...] - npos * log_denom) / npos


def _round_up(x, m):
    return ((x + m - 1) // m) * m


def _pick_block(pad_n, d_pad):
    """Square tile size: as big as sensible, VMEM-budgeted (v7x has 64 MiB)."""
    if pad_n % 512 == 0 and pad_n // 512 >= 2:   # keep >=2 row blocks for megacore
        blk = 512
    elif pad_n % 256 == 0:
        blk = 256
    else:
        blk = 128
    # double-buffered bf16 feature blocks + ~4 f32 [blk,blk] tile temporaries
    while blk > 128 and (8 * blk * d_pad + 16 * blk * blk) > 40 * 1024 * 1024:
        blk //= 2
    return blk


def _bf16_operands(features, temperature):
    """Anchor (1/T folded in) and contrast operands in bf16, PyTorch ordering."""
    bsz, n_views, dim = features.shape
    n = n_views * bsz
    # contrast_feature = torch.cat(torch.unbind(features, dim=1), dim=0)
    contrast = jnp.transpose(features, (1, 0, 2)).reshape(n, dim).astype(jnp.float32)
    a = (contrast * (1.0 / float(temperature))).astype(jnp.bfloat16)
    b = contrast.astype(jnp.bfloat16)
    return a, b


def sup_con_loss(
    features,
    labels=None,
    mask=None,
    temperature=0.07,
    contrast_mode="all",
    base_temperature=0.07,
):
    """JAX/Pallas equivalent of SupConLoss.forward (contrast_mode='all')."""
    features = jnp.asarray(features)
    if features.ndim < 3:
        raise ValueError("`features` needs to be [bsz, n_views, ...]")
    if features.ndim > 3:
        features = features.reshape(features.shape[0], features.shape[1], -1)
    if contrast_mode != "all":
        # TODO(synk): contrast_mode='one' (anchor = view 0 only) not implemented.
        raise ValueError("Only contrast_mode='all' is implemented")

    bsz, n_views, dim = features.shape
    if labels is not None and mask is not None:
        raise ValueError("Cannot define both `labels` and `mask`")
    if mask is not None:
        # TODO(synk): explicit (possibly asymmetric) [bsz,bsz] mask path is not
        # kernelized (it cannot be expressed as class-id equality).
        raise NotImplementedError("explicit `mask` argument not supported")

    if labels is None:
        cls = jnp.arange(bsz, dtype=jnp.int32)                 # SimCLR: eye(bsz)
        npos_b = jnp.full((bsz,), float(n_views - 1), jnp.float32)
    else:
        labels = jnp.asarray(labels).reshape(-1)
        if labels.shape[0] != bsz:
            raise ValueError("Num of labels does not match num of features")
        # TODO(synk): float labels that torch.eq would compare exactly are cast
        # to int32 here.
        cls = labels.astype(jnp.int32)
        same = cls[:, None] == cls[None, :]
        npos_b = n_views * jnp.sum(same, axis=1).astype(jnp.float32) - 1.0

    n = n_views * bsz
    a_bf, b_bf = _bf16_operands(features, temperature)          # [n, dim] each

    # ---- pad N and D to TPU-friendly sizes (no full-N fallback tile) ----
    pad_n = _round_up(n, 256) if n > 128 else _round_up(n, 128)
    d_pad = _round_up(dim + 1, 128)   # +1: "kill" coordinate for padded columns
    blk = _pick_block(pad_n, d_pad)

    # Class-id encoding: real ids -> 2*id (even); padding sentinels are odd and
    # distinct, so padded rows/cols can never register as positives.
    cls_enc = (2 * jnp.tile(cls, (n_views,))).astype(jnp.int32)
    rcls = jnp.full((pad_n, 1), -1, jnp.int32).at[:n, 0].set(cls_enc)
    ccls = jnp.full((1, pad_n), -3, jnp.int32).at[0, :n].set(cls_enc)
    npos = jnp.ones((pad_n, 1), jnp.float32).at[:n, 0].set(jnp.tile(npos_b, (n_views,)))

    # Anchors carry the 1/T scale; the extra feature coordinate drives padded
    # columns to sim = -1e9 so they vanish from the softmax denominator.
    a_pad = jnp.zeros((pad_n, d_pad), jnp.bfloat16)
    a_pad = a_pad.at[:n, :dim].set(a_bf)
    a_pad = a_pad.at[:, dim].set(1.0)
    bt_pad = jnp.zeros((d_pad, pad_n), jnp.bfloat16)
    bt_pad = bt_pad.at[:dim, :n].set(b_bf.T)
    bt_pad = bt_pad.at[dim, n:].set(-1e9)

    grid = (pad_n // blk, pad_n // blk)
    kernel = functools.partial(
        _supcon_kernel,
        out_scale=-(float(temperature) / float(base_temperature)),
    )

    per_anchor = pl.pallas_call(
        kernel,
        out_shape=jax.ShapeDtypeStruct((pad_n, 1), jnp.float32),
        grid_spec=pltpu.PrefetchScalarGridSpec(
            num_scalar_prefetch=0,
            grid=grid,
            in_specs=[
                pl.BlockSpec((blk, 1), lambda i, j: (i, 0)),       # row class ids
                pl.BlockSpec((1, blk), lambda i, j: (0, j)),       # col class ids
                pl.BlockSpec((blk, 1), lambda i, j: (i, 0)),       # n_pos per anchor
                pl.BlockSpec((blk, d_pad), lambda i, j: (i, 0)),   # anchors (resident over j)
                pl.BlockSpec((d_pad, blk), lambda i, j: (0, j)),   # contrast (streamed)
            ],
            out_specs=pl.BlockSpec((blk, 1), lambda i, j: (i, 0)),
            scratch_shapes=[pltpu.VMEM((blk, 1), jnp.float32)] * 3,
        ),
        compiler_params=pltpu.CompilerParams(
            dimension_semantics=("parallel", "arbitrary"),
            vmem_limit_bytes=48 * 1024 * 1024,
        ),
    )(rcls, ccls, npos, a_pad, bt_pad)

    # loss.view(anchor_count, batch_size).mean() == mean over the N real anchors.
    return jnp.sum(per_anchor[:n, 0]) / n


def _reference_sup_con_loss(features, labels=None, temperature=0.07,
                            base_temperature=0.07, match_kernel_rounding=False):
    """Pure-JAX reference mirroring the PyTorch forward (contrast_mode='all')."""
    features = jnp.asarray(features, jnp.float32)
    bsz, n_views, dim = features.shape
    n = n_views * bsz
    if labels is None:
        base_mask = jnp.eye(bsz, dtype=jnp.float32)
    else:
        l = jnp.asarray(labels).reshape(-1, 1)
        base_mask = (l == l.T).astype(jnp.float32)
    if match_kernel_rounding:
        a, b = _bf16_operands(features, temperature)
        sim = jnp.matmul(a.astype(jnp.float32), b.astype(jnp.float32).T,
                         precision=jax.lax.Precision.HIGHEST)
    else:
        contrast = jnp.transpose(features, (1, 0, 2)).reshape(n, dim)
        sim = jnp.matmul(contrast, contrast.T,
                         precision=jax.lax.Precision.HIGHEST) / temperature
    logits = sim - jnp.max(sim, axis=1, keepdims=True)
    logits_mask = 1.0 - jnp.eye(n, dtype=jnp.float32)
    full_mask = jnp.tile(base_mask, (n_views, n_views)) * logits_mask
    exp_logits = jnp.exp(logits) * logits_mask
    log_prob = logits - jnp.log(jnp.sum(exp_logits, axis=1, keepdims=True))
    mlpp = jnp.sum(full_mask * log_prob, axis=1) / jnp.sum(full_mask, axis=1)
    return jnp.mean(-(temperature / base_temperature) * mlpp)


if __name__ == "__main__":
    key = jax.random.PRNGKey(0)
    k1, k2, k3 = jax.random.split(key, 3)

    # ---- small SimCLR case: bsz=8, n_views=2, dim=32 (labels=None) ----
    feats = jax.random.normal(k1, (8, 2, 32), dtype=jnp.float32)
    feats = feats / jnp.linalg.norm(feats, axis=-1, keepdims=True)

    loss = jax.block_until_ready(sup_con_loss(feats))
    ref_m = _reference_sup_con_loss(feats, match_kernel_rounding=True)
    ref_f = _reference_sup_con_loss(feats)
    assert jnp.isfinite(loss), "SimCLR loss is not finite"
    assert jnp.allclose(loss, ref_m, atol=3e-3, rtol=3e-3), (loss, ref_m)
    assert jnp.allclose(loss, ref_f, atol=1e-1, rtol=1e-1), (loss, ref_f)

    # ---- supervised case (labels given) ----
    labels = jnp.array([0, 1, 2, 3, 0, 1, 2, 3], dtype=jnp.int32)
    loss_l = jax.block_until_ready(sup_con_loss(feats, labels=labels))
    ref_lm = _reference_sup_con_loss(feats, labels=labels, match_kernel_rounding=True)
    ref_lf = _reference_sup_con_loss(feats, labels=labels)
    assert jnp.isfinite(loss_l), "supervised loss is not finite"
    assert jnp.allclose(loss_l, ref_lm, atol=3e-3, rtol=3e-3), (loss_l, ref_lm)
    assert jnp.allclose(loss_l, ref_lf, atol=1e-1, rtol=1e-1), (loss_l, ref_lf)

    # ---- multi-tile case: exercises N padding + online softmax across tiles ----
    bsz2, n_views2, dim2 = 300, 2, 96        # N=600 -> padded to 768, blk=256, 3x3 grid
    f2 = jax.random.normal(k2, (bsz2, n_views2, dim2), dtype=jnp.float32)
    f2 = f2 / jnp.linalg.norm(f2, axis=-1, keepdims=True)
    lab2 = jax.random.randint(k3, (bsz2,), 0, 10, dtype=jnp.int32)
    loss2 = jax.block_until_ready(sup_con_loss(f2, labels=lab2))
    ref2 = _reference_sup_con_loss(f2, labels=lab2, match_kernel_rounding=True)
    assert jnp.isfinite(loss2), "multi-tile loss is not finite"
    assert jnp.allclose(loss2, ref2, atol=3e-3, rtol=3e-3), (loss2, ref2)

    print("KERNEL_OK")
</pallas_src>

<mosaic_0001>
module attributes {stable_mosaic.version = 11 : i64} {
  func.func @_supcon_kernel(%arg0: i32, %arg1: i32, %arg2: memref<128x1xi32, #tpu.memory_space<vmem>>, %arg3: memref<1x128xi32, #tpu.memory_space<vmem>>, %arg4: memref<128x1xf32, #tpu.memory_space<vmem>>, %arg5: memref<128x128xbf16, #tpu.memory_space<vmem>>, %arg6: memref<128x128xbf16, #tpu.memory_space<vmem>>, %arg7: memref<128x1xf32, #tpu.memory_space<vmem>>, %arg8: memref<128x1xf32, #tpu.memory_space<vmem>>, %arg9: memref<128x1xf32, #tpu.memory_space<vmem>>, %arg10: memref<128x1xf32, #tpu.memory_space<vmem>>) attributes {dimension_semantics = [#tpu.dimension_semantics<parallel>, #tpu.dimension_semantics<arbitrary>], iteration_bounds = array<i64: 1, 1>, scalar_prefetch = 0 : i64, scratch_operands = 3 : i64, tpu.core_type = #tpu.core_type<tc>, window_params = [{transform_indices = @transform_0, window_bounds = array<i64: 128, 1>}, {transform_indices = @transform_1, window_bounds = array<i64: 1, 128>}, {transform_indices = @transform_2, window_bounds = array<i64: 128, 1>}, {transform_indices = @transform_3, window_bounds = array<i64: 128, 128>}, {transform_indices = @transform_4, window_bounds = array<i64: 128, 128>}, {transform_indices = @transform_5, window_bounds = array<i64: 128, 1>}]} {
    %c0_i32 = arith.constant 0 : i32
    %0 = arith.cmpi eq, %arg1, %c0_i32 : i32
    %1 = arith.extui %0 : i1 to i32
    %c0_i32_0 = arith.constant 0 : i32
    %2 = arith.cmpi ne, %1, %c0_i32_0 : i32
    scf.if %2 {
      %cst_17 = arith.constant 0xFF800000 : f32
      %30 = vector.broadcast %cst_17 : f32 to vector<128x1xf32>
      %c0_18 = arith.constant 0 : index
      %c0_19 = arith.constant 0 : index
      %31 = vector.load %arg8[%c0_18, %c0_19] : memref<128x1xf32, #tpu.memory_space<vmem>>, vector<128x1xf32>
      tpu.vector_store %arg8[%c0_18, %c0_19], %30 {strides = array<i32>} : memref<128x1xf32, #tpu.memory_space<vmem>>, vector<128x1xf32>,
      %cst_20 = arith.constant 0.000000e+00 : f32
      %32 = vector.broadcast %cst_20 : f32 to vector<128x1xf32>
      %c0_21 = arith.constant 0 : index
      %c0_22 = arith.constant 0 : index
      %33 = vector.load %arg9[%c0_21, %c0_22] : memref<128x1xf32, #tpu.memory_space<vmem>>, vector<128x1xf32>
      tpu.vector_store %arg9[%c0_21, %c0_22], %32 {strides = array<i32>} : memref<128x1xf32, #tpu.memory_space<vmem>>, vector<128x1xf32>,
      %cst_23 = arith.constant 0.000000e+00 : f32
      %34 = vector.broadcast %cst_23 : f32 to vector<128x1xf32>
      %c0_24 = arith.constant 0 : index
      %c0_25 = arith.constant 0 : index
      %35 = vector.load %arg10[%c0_24, %c0_25] : memref<128x1xf32, #tpu.memory_space<vmem>>, vector<128x1xf32>
      tpu.vector_store %arg10[%c0_24, %c0_25], %34 {strides = array<i32>} : memref<128x1xf32, #tpu.memory_space<vmem>>, vector<128x1xf32>,
    } else {
    }
    %c0 = arith.constant 0 : index
    %c0_1 = arith.constant 0 : index
    %3 = vector.load %arg5[%c0, %c0_1] : memref<128x128xbf16, #tpu.memory_space<vmem>>, vector<128x128xbf16>
    %c0_2 = arith.constant 0 : index
    %c0_3 = arith.constant 0 : index
    %4 = vector.load %arg6[%c0_2, %c0_3] : memref<128x128xbf16, #tpu.memory_space<vmem>>, vector<128x128xbf16>
    %cst = arith.constant dense<0.000000e+00> : vector<128x128xf32>
    %5 = tpu.matmul %3, %4, %cst {dimension_numbers = #tpu.dot_dimension_numbers<[1], [0], [0], [1], [0, 0, 1, 1], [], []>} : vector<128x128xbf16>, vector<128x128xbf16>, vector<128x128xf32> -> vector<128x128xf32>
    %c0_4 = arith.constant 0 : index
    %c0_5 = arith.constant 0 : index
    %6 = vector.load %arg8[%c0_4, %c0_5] : memref<128x1xf32, #tpu.memory_space<vmem>>, vector<128x1xf32>
    %cst_6 = arith.constant dense<0xFF800000> : vector<128xf32>
    %7 = vector.multi_reduction <maximumf>, %5, %cst_6 [1] : vector<128x128xf32> to vector<128xf32>
    %8 = vector.shape_cast %7 : vector<128xf32> to vector<128x1xf32>
    %9 = arith.maximumf %6, %8 : vector<128x1xf32>
    %10 = arith.subf %6, %9 : vector<128x1xf32>
    %11 = math.exp %10 : vector<128x1xf32>
    %12 = vector.broadcast %9 : vector<128x1xf32> to vector<128x128xf32>
    %13 = arith.subf %5, %12 : vector<128x128xf32>
    %14 = math.exp %13 : vector<128x128xf32>
    %c0_7 = arith.constant 0 : index
    %c0_8 = arith.constant 0 : index
    %15 = vector.load %arg8[%c0_7, %c0_8] : memref<128x1xf32, #tpu.memory_space<vmem>>, vector<128x1xf32>
    tpu.vector_store %arg8[%c0_7, %c0_8], %9 {strides = array<i32>} : memref<128x1xf32, #tpu.memory_space<vmem>>, vector<128x1xf32>,
    %c0_9 = arith.constant 0 : index
    %c0_10 = arith.constant 0 : index
    %16 = vector.load %arg2[%c0_9, %c0_10] : memref<128x1xi32, #tpu.memory_space<vmem>>, vector<128x1xi32>
    %c0_11 = arith.constant 0 : index
    %c0_12 = arith.constant 0 : index
    %17 = vector.load %arg3[%c0_11, %c0_12] : memref<1x128xi32, #tpu.memory_space<vmem>>, vector<1x128xi32>
    %18 = vector.broadcast %16 : vector<128x1xi32> to vector<128x128xi32>
    %19 = vector.broadcast %17 : vector<1x128xi32> to vector<128x128xi32>
    %20 = arith.cmpi eq, %18, %19 : vector<128x128xi32>
    %21 = arith.cmpi ne, %arg0, %arg1 : i32
    %22 = arith.extui %21 : i1 to i32
    %c0_i32_13 = arith.constant 0 : i32
    %23 = arith.cmpi ne, %22, %c0_i32_13 : i32
    scf.if %23 {
      %c0_17 = arith.constant 0 : index
      %c0_18 = arith.constant 0 : index
      %30 = vector.load %arg9[%c0_17, %c0_18] : memref<128x1xf32, #tpu.memory_space<vmem>>, vector<128x1xf32>
      %31 = arith.mulf %11, %30 : vector<128x1xf32>
      %cst_19 = arith.constant dense<0.000000e+00> : vector<128xf32>
      %32 = vector.multi_reduction <add>, %14, %cst_19 [1] : vector<128x128xf32> to vector<128xf32>
      %33 = vector.shape_cast %32 : vector<128xf32> to vector<128x1xf32>
      %34 = arith.addf %31, %33 : vector<128x1xf32>
      %c0_20 = arith.constant 0 : index
      %c0_21 = arith.constant 0 : index
      %35 = vector.load %arg9[%c0_20, %c0_21] : memref<128x1xf32, #tpu.memory_space<vmem>>, vector<128x1xf32>
      tpu.vector_store %arg9[%c0_20, %c0_21], %34 {strides = array<i32>} : memref<128x1xf32, #tpu.memory_space<vmem>>, vector<128x1xf32>,
      %c0_22 = arith.constant 0 : index
      %c0_23 = arith.constant 0 : index
      %36 = vector.load %arg10[%c0_22, %c0_23] : memref<128x1xf32, #tpu.memory_space<vmem>>, vector<128x1xf32>
      %cst_24 = arith.constant 0.000000e+00 : f32
      %37 = vector.broadcast %cst_24 : f32 to vector<128x128xf32>
      %38 = arith.select %20, %5, %37 : vector<128x128xi1>, vector<128x128xf32>
      %cst_25 = arith.constant dense<0.000000e+00> : vector<128xf32>
      %39 = vector.multi_reduction <add>, %38, %cst_25 [1] : vector<128x128xf32> to vector<128xf32>
      %40 = vector.shape_cast %39 : vector<128xf32> to vector<128x1xf32>
      %41 = arith.addf %36, %40 : vector<128x1xf32>
      %c0_26 = arith.constant 0 : index
      %c0_27 = arith.constant 0 : index
      %42 = vector.load %arg10[%c0_26, %c0_27] : memref<128x1xf32, #tpu.memory_space<vmem>>, vector<128x1xf32>
      tpu.vector_store %arg10[%c0_26, %c0_27], %41 {strides = array<i32>} : memref<128x1xf32, #tpu.memory_space<vmem>>, vector<128x1xf32>,
    } else {
    }
    %24 = arith.cmpi eq, %arg0, %arg1 : i32
    %25 = arith.extui %24 : i1 to i32
    %c0_i32_14 = arith.constant 0 : i32
    %26 = arith.cmpi ne, %25, %c0_i32_14 : i32
    scf.if %26 {
      %30 = tpu.iota {dimensions = array<i32: 0>} : vector<128x128xi32>
      %31 = tpu.iota {dimensions = array<i32: 1>} : vector<128x128xi32>
      %32 = arith.cmpi ne, %30, %31 : vector<128x128xi32>
      %c0_17 = arith.constant 0 : index
      %c0_18 = arith.constant 0 : index
      %33 = vector.load %arg9[%c0_17, %c0_18] : memref<128x1xf32, #tpu.memory_space<vmem>>, vector<128x1xf32>
      %34 = arith.mulf %11, %33 : vector<128x1xf32>
      %cst_19 = arith.constant 0.000000e+00 : f32
      %35 = vector.broadcast %cst_19 : f32 to vector<128x128xf32>
      %36 = arith.select %32, %14, %35 : vector<128x128xi1>, vector<128x128xf32>
      %cst_20 = arith.constant dense<0.000000e+00> : vector<128xf32>
      %37 = vector.multi_reduction <add>, %36, %cst_20 [1] : vector<128x128xf32> to vector<128xf32>
      %38 = vector.shape_cast %37 : vector<128xf32> to vector<128x1xf32>
      %39 = arith.addf %34, %38 : vector<128x1xf32>
      %c0_21 = arith.constant 0 : index
      %c0_22 = arith.constant 0 : index
      %40 = vector.load %arg9[%c0_21, %c0_22] : memref<128x1xf32, #tpu.memory_space<vmem>>, vector<128x1xf32>
      tpu.vector_store %arg9[%c0_21, %c0_22], %39 {strides = array<i32>} : memref<128x1xf32, #tpu.memory_space<vmem>>, vector<128x1xf32>,
      %c0_23 = arith.constant 0 : index
      %c0_24 = arith.constant 0 : index
      %41 = vector.load %arg10[%c0_23, %c0_24] : memref<128x1xf32, #tpu.memory_space<vmem>>, vector<128x1xf32>
      %42 = arith.andi %20, %32 : vector<128x128xi1>
      %cst_25 = arith.constant 0.000000e+00 : f32
      %43 = vector.broadcast %cst_25 : f32 to vector<128x128xf32>
      %44 = arith.select %42, %5, %43 : vector<128x128xi1>, vector<128x128xf32>
      %cst_26 = arith.constant dense<0.000000e+00> : vector<128xf32>
      %45 = vector.multi_reduction <add>, %44, %cst_26 [1] : vector<128x128xf32> to vector<128xf32>
      %46 = vector.shape_cast %45 : vector<128xf32> to vector<128x1xf32>
      %47 = arith.addf %41, %46 : vector<128x1xf32>
      %c0_27 = arith.constant 0 : index
      %c0_28 = arith.constant 0 : index
      %48 = vector.load %arg10[%c0_27, %c0_28] : memref<128x1xf32, #tpu.memory_space<vmem>>, vector<128x1xf32>
      tpu.vector_store %arg10[%c0_27, %c0_28], %47 {strides = array<i32>} : memref<128x1xf32, #tpu.memory_space<vmem>>, vector<128x1xf32>,
    } else {
    }
    %c0_i32_15 = arith.constant 0 : i32
    %27 = arith.cmpi eq, %arg1, %c0_i32_15 : i32
    %28 = arith.extui %27 : i1 to i32
    %c0_i32_16 = arith.constant 0 : i32
    %29 = arith.cmpi ne, %28, %c0_i32_16 : i32
    scf.if %29 {
      %c0_17 = arith.constant 0 : index
      %c0_18 = arith.constant 0 : index
      %30 = vector.load %arg4[%c0_17, %c0_18] : memref<128x1xf32, #tpu.memory_space<vmem>>, vector<128x1xf32>
      %c0_19 = arith.constant 0 : index
      %c0_20 = arith.constant 0 : index
      %31 = vector.load %arg8[%c0_19, %c0_20] : memref<128x1xf32, #tpu.memory_space<vmem>>, vector<128x1xf32>
      %c0_21 = arith.constant 0 : index
      %c0_22 = arith.constant 0 : index
      %32 = vector.load %arg9[%c0_21, %c0_22] : memref<128x1xf32, #tpu.memory_space<vmem>>, vector<128x1xf32>
      %33 = math.log %32 : vector<128x1xf32>
      %34 = arith.addf %31, %33 : vector<128x1xf32>
      %c0_23 = arith.constant 0 : index
      %c0_24 = arith.constant 0 : index
      %35 = vector.load %arg10[%c0_23, %c0_24] : memref<128x1xf32, #tpu.memory_space<vmem>>, vector<128x1xf32>
      %36 = arith.mulf %30, %34 : vector<128x1xf32>
      %37 = arith.subf %35, %36 : vector<128x1xf32>
      %cst_25 = arith.constant -1.000000e+00 : f32
      %38 = vector.broadcast %cst_25 : f32 to vector<128x1xf32>
      %39 = arith.mulf %38, %37 : vector<128x1xf32>
      %40 = arith.divf %39, %30 : vector<128x1xf32>
      %c0_26 = arith.constant 0 : index
      %c0_27 = arith.constant 0 : index
      %41 = vector.load %arg7[%c0_26, %c0_27] : memref<128x1xf32, #tpu.memory_space<vmem>>, vector<128x1xf32>
      tpu.vector_store %arg7[%c0_26, %c0_27], %40 {strides = array<i32>} : memref<128x1xf32, #tpu.memory_space<vmem>>, vector<128x1xf32>,
    } else {
    }
    return
  }
  func.func @transform_0(%arg0: i32, %arg1: i32) -> (i32, i32) {
    %c0_i32 = arith.constant 0 : i32
    %c0_i32_0 = arith.constant 0 : i32
    return %arg0, %c0_i32 : i32, i32
  }
  func.func @transform_1(%arg0: i32, %arg1: i32) -> (i32, i32) {
    %c0_i32 = arith.constant 0 : i32
    %c0_i32_0 = arith.constant 0 : i32
    return %c0_i32, %arg1 : i32, i32
  }
  func.func @transform_2(%arg0: i32, %arg1: i32) -> (i32, i32) {
    %c0_i32 = arith.constant 0 : i32
    %c0_i32_0 = arith.constant 0 : i32
    return %arg0, %c0_i32 : i32, i32
  }
  func.func @transform_3(%arg0: i32, %arg1: i32) -> (i32, i32) {
    %c0_i32 = arith.constant 0 : i32
    %c0_i32_0 = arith.constant 0 : i32
    return %arg0, %c0_i32 : i32, i32
  }
  func.func @transform_4(%arg0: i32, %arg1: i32) -> (i32, i32) {
    %c0_i32 = arith.constant 0 : i32
    %c0_i32_0 = arith.constant 0 : i32
    return %c0_i32, %arg1 : i32, i32
  }
  func.func @transform_5(%arg0: i32, %arg1: i32) -> (i32, i32) {
    %c0_i32 = arith.constant 0 : i32
    %c0_i32_0 = arith.constant 0 : i32
    return %arg0, %c0_i32 : i32, i32
  }
}

</mosaic_0001>

<bundles_post_ra>
// kernel: tpu_custom_call.1
= control target key start
LH: loop header
LB: loop body
LE: loop exit
PB: predicated region body
PF: predicated region fallthrough
CT: control target
= control target key end

     0   :  { %v1545_v1 = vmov 0   ;;  %vm25_vm0 = vcmask 7168   ;;  %v1546_v19 = vmov -inf   ;;  %v1547_v35 = vmov 0.0   ;;  %s2426_s4 = inlined_call_operand.vmem [shape: bf16[128,128], index: 4, kind: input, shape index: {}]   ;;  %s2427_s3 = inlined_call_operand.vmem [shape: bf16[128,128], index: 3, kind: input, shape index: {}]   ;;  %s2428_s0 = inlined_call_operand.vmem [shape: s32[128,1], index: 0, kind: input, shape index: {}]   ;;  %s2429_s1 = inlined_call_operand.vmem [shape: s32[1,128], index: 1, kind: input, shape index: {}]   ;;  %s2430_s2 = inlined_call_operand.vmem [shape: f32[128,1], index: 2, kind: input, shape index: {}]   ;;  %s2431_s5 = inlined_call_operand.vmem [shape: f32[128,1], index: 5, kind: output, shape index: {}]  }
   0x1   :  { %v1401_v0 = vld [vmem:[%s2426_s4 + $0x38] sm:$0xff]   ;;  %1399 = vset.pattern.permute.xlu1 %v1545_v1  ;;  %1400 = vset.pattern.permute.xlu0 %v1545_v1  ;;  %v1402_v2 = vld [vmem:[%s2426_s4 + $0x30] sm:$0xff]   ;;  %v1403_v3 = vld [vmem:[%s2426_s4 + $0x28] sm:$0xff]   ;;  %36 = vst.msk [vmem:[#allocation2 + $0x50] sm:$0xff] %vm25_vm0, %v1546_v19 }
   0x2   :  { %1348 = vmatprep.subr.bf16.mxu0 %v1401_v0  ;;  %1380 = vmatprep.subr.bf16.mxu1 %v1401_v0  ;;  %v1404_v4 = vld [vmem:[%s2426_s4 + $0x20] sm:$0xff]   ;;  %v1405_v7 = vld [vmem:[%s2426_s4 + $0x18] sm:$0xff]   ;;  %v1406_v8 = vld [vmem:[%s2426_s4 + $0x10] sm:$0xff]   ;;  %26 = vst.msk [vmem:[#allocation2] sm:$0xff] %vm25_vm0, %v1546_v19 }
   0x3   :  { %1349 = vmatpush3.bf16.msra.mxu0 %v1401_v0  ;;  %1388 = vmatpush3.bf16.msra.mxu1 %v1401_v0  ;;  %v1409_v5 = vld [vmem:[%s2427_s3] sm:$0xff]   ;;  %v557_v10 = vld [vmem:[%s2428_s0 + $0x8] sm:$0xff]  ;;  %v1413_v15 = vld [vmem:[%s2427_s3 + $0x10] sm:$0xff]   ;;  %27 = vst.msk [vmem:[#allocation2 + $0x8] sm:$0xff] %vm25_vm0, %v1546_v19 }
   0x4   :  { %1350 = vmatprep.subr.bf16.mxu0 %v1402_v2  ;;  %1381 = vmatprep.subr.bf16.mxu1 %v1402_v2  ;;  %v1410_v6 = vld [vmem:[%s2427_s3 + $0x20] sm:$0xff]   ;;  %v1407_v11 = vld [vmem:[%s2426_s4 + $0x8] sm:$0xff]   ;;  %v1415_v16 = vld [vmem:[%s2427_s3 + $0x30] sm:$0xff]   ;;  %28 = vst.msk [vmem:[#allocation2 + $0x10] sm:$0xff] %vm25_vm0, %v1546_v19 }
   0x5   :  { %1364 = vmatprep.mubr.bf16.mxu0 %v1409_v5  ;;  %1372 = vmatprep.mubr.bf16.mxu1 %v1410_v6  ;;  %v556_v9 = vld [vmem:[%s2428_s0] sm:$0xff]  ;;  %v1411_v13 = vld [vmem:[%s2427_s3 + $0x8] sm:$0xff]   ;;  %v1414_v17 = vld [vmem:[%s2427_s3 + $0x18] sm:$0xff]   ;;  %29 = vst.msk [vmem:[#allocation2 + $0x18] sm:$0xff] %vm25_vm0, %v1546_v19 }
   0x6   :  { %574 = vperm.xlu1 %1399, %v556_v9   ;;  %577 = vperm.xlu0 %1400, %v557_v10   ;;  %v1408_v12 = vld [vmem:[%s2426_s4] sm:$0xff]   ;;  %v1412_v14 = vld [vmem:[%s2427_s3 + $0x28] sm:$0xff]   ;;  %v1416_v18 = vld [vmem:[%s2427_s3 + $0x38] sm:$0xff]   ;;  %30 = vst.msk [vmem:[#allocation2 + $0x20] sm:$0xff] %vm25_vm0, %v1546_v19 }
   0x7   :  { %1351 = vmatpush3.bf16.msra.mxu0 %v1402_v2  ;;  %1389 = vmatpush3.bf16.msra.mxu1 %v1402_v2  ;;  %31 = vst.msk [vmem:[#allocation2 + $0x28] sm:$0xff] %vm25_vm0, %v1546_v19  ;;  %32 = vst.msk [vmem:[#allocation2 + $0x30] sm:$0xff] %vm25_vm0, %v1546_v19 }
   0x8   :  { %1352 = vmatprep.subr.bf16.mxu0 %v1403_v3  ;;  %1382 = vmatprep.subr.bf16.mxu1 %v1403_v3  ;;  %33 = vst.msk [vmem:[#allocation2 + $0x38] sm:$0xff] %vm25_vm0, %v1546_v19  ;;  %34 = vst.msk [vmem:[#allocation2 + $0x40] sm:$0xff] %vm25_vm0, %v1546_v19  ;;  %v1732_v39 = vld [vmem:[#allocation2 + $0x50] sm:$0xff] }
   0x9   :  { %35 = vst.msk [vmem:[#allocation2 + $0x48] sm:$0xff] %vm25_vm0, %v1546_v19  ;;  %37 = vst.msk [vmem:[#allocation2 + $0x58] sm:$0xff] %vm25_vm0, %v1546_v19  ;;  %v1742_v45 = vld [vmem:[#allocation2] sm:$0xff] }
   0xa   :  { %38 = vst.msk [vmem:[#allocation2 + $0x60] sm:$0xff] %vm25_vm0, %v1546_v19  ;;  %39 = vst.msk [vmem:[#allocation2 + $0x68] sm:$0xff] %vm25_vm0, %v1546_v19  ;;  %v1781_v61 = vld [vmem:[#allocation2 + $0x8] sm:$0xff] }
   0xb   :  { %1353 = vmatpush3.bf16.msra.mxu0 %v1403_v3  ;;  %1390 = vmatpush3.bf16.msra.mxu1 %v1403_v3  ;;  %40 = vst.msk [vmem:[#allocation2 + $0x70] sm:$0xff] %vm25_vm0, %v1546_v19  ;;  %41 = vst.msk [vmem:[#allocation2 + $0x78] sm:$0xff] %vm25_vm0, %v1546_v19  ;;  %v1734_v40 = vld [vmem:[#allocation2 + $0x10] sm:$0xff] }
   0xc   :  { %1354 = vmatprep.subr.bf16.mxu0 %v1404_v4  ;;  %1383 = vmatprep.subr.bf16.mxu1 %v1404_v4  ;;  %58 = vst.msk [vmem:[#allocation4] sm:$0xff] %vm25_vm0, %v1547_v35  ;;  %42 = vst.msk [vmem:[#allocation3] sm:$0xff] %vm25_vm0, %v1547_v35  ;;  %v1744_v46 = vld [vmem:[#allocation2 + $0x18] sm:$0xff] }
   0xd   :  { %43 = vst.msk [vmem:[#allocation3 + $0x8] sm:$0xff] %vm25_vm0, %v1547_v35  ;;  %44 = vst.msk [vmem:[#allocation3 + $0x10] sm:$0xff] %vm25_vm0, %v1547_v35 }
   0xe   :  { %45 = vst.msk [vmem:[#allocation3 + $0x18] sm:$0xff] %vm25_vm0, %v1547_v35  ;;  %46 = vst.msk [vmem:[#allocation3 + $0x20] sm:$0xff] %vm25_vm0, %v1547_v35  ;;  %v1801_v5 = vld [vmem:[#allocation2 + $0x30] sm:$0xff] }
   0xf   :  { %1355 = vmatpush3.bf16.msra.mxu0 %v1404_v4  ;;  %1391 = vmatpush3.bf16.msra.mxu1 %v1404_v4  ;;  %47 = vst.msk [vmem:[#allocation3 + $0x28] sm:$0xff] %vm25_vm0, %v1547_v35  ;;  %48 = vst.msk [vmem:[#allocation3 + $0x30] sm:$0xff] %vm25_vm0, %v1547_v35  ;;  %v1761_v53 = vld [vmem:[#allocation2 + $0x40] sm:$0xff]  ;;  %v1803_v6 = vld [vmem:[#allocation2 + $0x38] sm:$0xff] }
  0x10   :  { %1356 = vmatprep.subr.bf16.mxu0 %v1405_v7  ;;  %1384 = vmatprep.subr.bf16.mxu1 %v1405_v7  ;;  %49 = vst.msk [vmem:[#allocation3 + $0x38] sm:$0xff] %vm25_vm0, %v1547_v35  ;;  %50 = vst.msk [vmem:[#allocation3 + $0x40] sm:$0xff] %vm25_vm0, %v1547_v35  ;;  %v1763_v54 = vld [vmem:[#allocation2 + $0x58] sm:$0xff]  ;;  %v1783_v62 = vld [vmem:[#allocation2 + $0x48] sm:$0xff] }
  0x11   :  { %51 = vst.msk [vmem:[#allocation3 + $0x48] sm:$0xff] %vm25_vm0, %v1547_v35  ;;  %52 = vst.msk [vmem:[#allocation3 + $0x50] sm:$0xff] %vm25_vm0, %v1547_v35 }
  0x12   :  { %53 = vst.msk [vmem:[#allocation3 + $0x58] sm:$0xff] %vm25_vm0, %v1547_v35  ;;  %54 = vst.msk [vmem:[#allocation3 + $0x60] sm:$0xff] %vm25_vm0, %v1547_v35 }
  0x13   :  { %1357 = vmatpush3.bf16.msra.mxu0 %v1405_v7  ;;  %1392 = vmatpush3.bf16.msra.mxu1 %v1405_v7  ;;  %55 = vst.msk [vmem:[#allocation3 + $0x68] sm:$0xff] %vm25_vm0, %v1547_v35  ;;  %56 = vst.msk [vmem:[#allocation3 + $0x70] sm:$0xff] %vm25_vm0, %v1547_v35 }
  0x14   :  { %1358 = vmatprep.subr.bf16.mxu0 %v1406_v8  ;;  %1385 = vmatprep.subr.bf16.mxu1 %v1406_v8  ;;  %57 = vst.msk [vmem:[#allocation3 + $0x78] sm:$0xff] %vm25_vm0, %v1547_v35  ;;  %59 = vst.msk [vmem:[#allocation4 + $0x8] sm:$0xff] %vm25_vm0, %v1547_v35 }
  0x15   :  { %60 = vst.msk [vmem:[#allocation4 + $0x10] sm:$0xff] %vm25_vm0, %v1547_v35  ;;  %61 = vst.msk [vmem:[#allocation4 + $0x18] sm:$0xff] %vm25_vm0, %v1547_v35 }
  0x16   :  { %62 = vst.msk [vmem:[#allocation4 + $0x20] sm:$0xff] %vm25_vm0, %v1547_v35  ;;  %63 = vst.msk [vmem:[#allocation4 + $0x28] sm:$0xff] %vm25_vm0, %v1547_v35 }
  0x17   :  { %1359 = vmatpush3.bf16.msra.mxu0 %v1406_v8  ;;  %1393 = vmatpush3.bf16.msra.mxu1 %v1406_v8  ;;  %64 = vst.msk [vmem:[#allocation4 + $0x30] sm:$0xff] %vm25_vm0, %v1547_v35  ;;  %65 = vst.msk [vmem:[#allocation4 + $0x38] sm:$0xff] %vm25_vm0, %v1547_v35 }
  0x18   :  { %1360 = vmatprep.subr.bf16.mxu0 %v1407_v11  ;;  %1386 = vmatprep.subr.bf16.mxu1 %v1407_v11  ;;  %66 = vst.msk [vmem:[#allocation4 + $0x40] sm:$0xff] %vm25_vm0, %v1547_v35  ;;  %67 = vst.msk [vmem:[#allocation4 + $0x48] sm:$0xff] %vm25_vm0, %v1547_v35 }
  0x19   :  { %68 = vst.msk [vmem:[#allocation4 + $0x50] sm:$0xff] %vm25_vm0, %v1547_v35  ;;  %69 = vst.msk [vmem:[#allocation4 + $0x58] sm:$0xff] %vm25_vm0, %v1547_v35 }
  0x1a   :  { %70 = vst.msk [vmem:[#allocation4 + $0x60] sm:$0xff] %vm25_vm0, %v1547_v35  ;;  %71 = vst.msk [vmem:[#allocation4 + $0x68] sm:$0xff] %vm25_vm0, %v1547_v35 }
  0x1b   :  { %1361 = vmatpush3.bf16.msra.mxu0 %v1407_v11  ;;  %1394 = vmatpush3.bf16.msra.mxu1 %v1407_v11  ;;  %72 = vst.msk [vmem:[#allocation4 + $0x70] sm:$0xff] %vm25_vm0, %v1547_v35  ;;  %73 = vst.msk [vmem:[#allocation4 + $0x78] sm:$0xff] %vm25_vm0, %v1547_v35 }
  0x1c   :  { %1362 = vmatprep.subr.bf16.mxu0 %v1408_v12  ;;  %1387 = vmatprep.subr.bf16.mxu1 %v1408_v12  ;;  %2444 = vst [vmem:[#allocation6_spill] sm:$0xff] %v1801_v5 }
  0x1f   :  { %1363 = vmatpush3.bf16.msra.mxu0 %v1408_v12  ;;  %1395 = vmatpush3.bf16.msra.mxu1 %v1408_v12 }
  0x22   :  { %1365 = vmatmul.mubr.bf16.vlgmr.msra.gmra.mxu0 %v1411_v13  ;;  %1373 = vmatmul.mubr.bf16.vlgmr.msra.gmra.mxu1 %v1412_v14  ;;  %v1821_v13 = vld [vmem:[#allocation2 + $0x70] sm:$0xff]  ;;  %v1823_v14 = vld [vmem:[#allocation2 + $0x78] sm:$0xff] }
  0x23   :  { %1368 = vmatprep.mubr.bf16.mxu0 %v1413_v15  ;;  %1376 = vmatprep.mubr.bf16.mxu1 %v1415_v16  ;;  %2446 = vst [vmem:[#allocation8_spill] sm:$0xff] %v1821_v13  ;;  %v561_v15 = vld [vmem:[%s2428_s0 + $0x28] sm:$0xff] }
  0x2a   :  { %1369 = vmatmul.mubr.bf16.gmra.mxu0 %v1414_v17  ;;  %1377 = vmatmul.mubr.bf16.gmra.mxu1 %v1416_v18 }
  0x81   :  { %v1728_v37 = vpop.permute.xlu1 %574  ;;  %v1730_v38 = vpop.permute.xlu0 %577 }
  0xe2   :  { %v1648_v20 = vpop.f32.mrf.mxu0  ;;  %v1650_v21 = vpop.f32.mrf.mxu1 }
  0xe3   :  { %335 = vmax.xlane.f32.xlu0 %v1650_v21  ;;  %319 = vmax.xlane.f32.xlu1 %v1648_v20 }
  0xe4   :  { %v1654_v22 = vpop.f32.mrf.mxu0  ;;  %v1656_v23 = vpop.f32.mrf.mxu1 }
  0xe6   :  { %v1658_v24 = vpop.f32.mrf.mxu0  ;;  %v1660_v25 = vpop.f32.mrf.mxu1 }
  0xe7   :  { %315 = vmax.xlane.f32.xlu0 %v1654_v22  ;;  %321 = vmax.xlane.f32.xlu1 %v1658_v24 }
  0xe8   :  { %v1664_v26 = vpop.f32.mrf.mxu0  ;;  %v1666_v27 = vpop.f32.mrf.mxu1 }
  0xea   :  { %v1668_v28 = vpop.f32.mrf.mxu0  ;;  %v1674_v30 = vpop.f32.mrf.mxu1 }
  0xeb   :  { %331 = vmax.xlane.f32.xlu0 %v1656_v23  ;;  %337 = vmax.xlane.f32.xlu1 %v1660_v25 }
  0xec   :  { %v1672_v29 = vpop.f32.mrf.mxu0  ;;  %v1680_v32 = vpop.f32.mrf.mxu1 }
  0xee   :  { %v1678_v31 = vpop.f32.mrf.mxu0  ;;  %v1684_v33 = vpop.f32.mrf.mxu1 }
  0xef   :  { %317 = vmax.xlane.f32.xlu0 %v1664_v26  ;;  %333 = vmax.xlane.f32.xlu1 %v1666_v27 }
  0xf0   :  { %v1688_v34 = vpop.f32.mrf.mxu0  ;;  %v1724_v36 = vpop.f32.mrf.mxu1 }
  0xf3   :  { %327 = vmax.xlane.f32.xlu0 %v1668_v28  ;;  %329 = vmax.xlane.f32.xlu1 %v1678_v31 }
  0xf7   :  { %343 = vmax.xlane.f32.xlu0 %v1674_v30  ;;  %345 = vmax.xlane.f32.xlu1 %v1684_v33 }
  0xfb   :  { %323 = vmax.xlane.f32.xlu0 %v1672_v29  ;;  %325 = vmax.xlane.f32.xlu1 %v1688_v34 }
  0xff   :  { %339 = vmax.xlane.f32.xlu0 %v1680_v32  ;;  %341 = vmax.xlane.f32.xlu1 %v1724_v36 }
 0x16c   :  { %v336_v41 = vpop.xlane.xlu0 %335  ;;  %v320_v42 = vpop.xlane.xlu1 %319 }
 0x16d   :  { %v1737_v43 = vmax.f32 %v1732_v39, %v336_v41  ;;  %v1740_v44 = vmax.f32 %v1734_v40, %v320_v42  ;;  %v1840_v41 = vld [vmem:[#allocation2 + $0x20] sm:$0xff]  ;;  %v1842_v42 = vld [vmem:[#allocation2 + $0x28] sm:$0xff] }
 0x16e   :  { %2448 = vst [vmem:[#allocation10_spill] sm:$0xff] %v1840_v41 }
 0x16f   :  { %550 = vst.msk [vmem:[#allocation2 + $0x50] sm:$0xff] %vm25_vm0, %v1737_v43  ;;  %542 = vst.msk [vmem:[#allocation2 + $0x10] sm:$0xff] %vm25_vm0, %v1740_v44  ;;  %423 = vperm.xlu1 %1399, %v1740_v44  }
 0x170   :  { %v316_v49 = vpop.xlane.xlu0 %315  ;;  %v322_v50 = vpop.xlane.xlu1 %321 }
 0x171   :  { %v1756_v51 = vmax.f32 %v1742_v45, %v316_v49  ;;  %v1759_v52 = vmax.f32 %v1744_v46, %v322_v50  ;;  %v567_v49 = vld [vmem:[%s2428_s0 + $0x58] sm:$0xff] }
 0x173   :  { %540 = vst.msk [vmem:[#allocation2] sm:$0xff] %vm25_vm0, %v1756_v51  ;;  %543 = vst.msk [vmem:[#allocation2 + $0x18] sm:$0xff] %vm25_vm0, %v1759_v52  ;;  %413 = vperm.xlu0 %1400, %v1756_v51   ;;  %463 = vperm.xlu1 %1399, %v1737_v43  }
 0x174   :  { %v332_v57 = vpop.xlane.xlu0 %331  ;;  %v338_v58 = vpop.xlane.xlu1 %337 }
 0x175   :  { %v1776_v59 = vmax.f32 %v1761_v53, %v332_v57  ;;  %v1779_v60 = vmax.f32 %v1763_v54, %v338_v58 }
 0x177   :  { %548 = vst.msk [vmem:[#allocation2 + $0x40] sm:$0xff] %vm25_vm0, %v1776_v59  ;;  %551 = vst.msk [vmem:[#allocation2 + $0x58] sm:$0xff] %vm25_vm0, %v1779_v60  ;;  %453 = vperm.xlu1 %1399, %v1776_v59   ;;  %468 = vperm.xlu0 %1400, %v1779_v60  }
 0x178   :  { %v318_v1 = vpop.xlane.xlu0 %317  ;;  %v334_v2 = vpop.xlane.xlu1 %333 }
 0x179   :  { %v1796_v3 = vmax.f32 %v1781_v61, %v318_v1  ;;  %v1799_v4 = vmax.f32 %v1783_v62, %v334_v2  ;;  %v559_v1 = vld [vmem:[%s2428_s0 + $0x18] sm:$0xff] }
 0x17b   :  { %2443 = vst [vmem:[#allocation5_spill] sm:$0xff] %v1796_v3  ;;  %541 = vst.msk [vmem:[#allocation2 + $0x8] sm:$0xff] %vm25_vm0, %v1796_v3  ;;  %428 = vperm.xlu1 %1399, %v1759_v52   ;;  %458 = vperm.xlu0 %1400, %v1799_v4  }
 0x17c   :  { %549 = vst.msk [vmem:[#allocation2 + $0x48] sm:$0xff] %vm25_vm0, %v1799_v4  ;;  %v328_v9 = vpop.xlane.xlu0 %327  ;;  %v330_v10 = vpop.xlane.xlu1 %329 }
 0x17d   :  { %v1816_v11 = vmax.f32 %v1801_v5, %v328_v9  ;;  %v1819_v12 = vmax.f32 %v1803_v6, %v330_v10  ;;  %v1863_v10 = vld [vmem:[#allocation2 + $0x60] sm:$0xff] }
 0x17e   :  { %2450 = vst [vmem:[#allocation12_spill] sm:$0xff] %v1863_v10 }
 0x17f   :  { %2445 = vst [vmem:[#allocation7_spill] sm:$0xff] %v1816_v11  ;;  %546 = vst.msk [vmem:[#allocation2 + $0x30] sm:$0xff] %vm25_vm0, %v1816_v11  ;;  %418 = vperm.xlu1 %1399, %v1796_v3  }
 0x180   :  { %547 = vst.msk [vmem:[#allocation2 + $0x38] sm:$0xff] %vm25_vm0, %v1819_v12  ;;  %v344_v17 = vpop.xlane.xlu0 %343  ;;  %v346_v18 = vpop.xlane.xlu1 %345 }
 0x181   :  { %v1835_v19 = vmax.f32 %v1821_v13, %v344_v17  ;;  %v1838_v35 = vmax.f32 %v1823_v14, %v346_v18  ;;  %v1865_v17 = vld [vmem:[#allocation2 + $0x68] sm:$0xff] }
 0x182   :  { %2451 = vst [vmem:[#allocation13_spill] sm:$0xff] %v1865_v17 }
 0x183   :  { %2447 = vst [vmem:[#allocation9_spill] sm:$0xff] %v1835_v19  ;;  %554 = vst.msk [vmem:[#allocation2 + $0x70] sm:$0xff] %vm25_vm0, %v1835_v19  ;;  %443 = vperm.xlu1 %1399, %v1816_v11   ;;  %488 = vperm.xlu0 %1400, %v1838_v35  }
 0x184   :  { %555 = vst.msk [vmem:[#allocation2 + $0x78] sm:$0xff] %vm25_vm0, %v1838_v35  ;;  %v324_v57 = vpop.xlane.xlu0 %323  ;;  %v326_v58 = vpop.xlane.xlu1 %325 }
 0x185   :  { %v1858_v2 = vmax.f32 %v1840_v41, %v324_v57  ;;  %v1861_v9 = vmax.f32 %v1842_v42, %v326_v58 }
 0x187   :  { %2449 = vst [vmem:[#allocation11_spill] sm:$0xff] %v1858_v2  ;;  %544 = vst.msk [vmem:[#allocation2 + $0x20] sm:$0xff] %vm25_vm0, %v1858_v2  ;;  %483 = vperm.xlu1 %1399, %v1835_v19   ;;  %583 = vperm.xlu0 %1400, %v559_v1   ;;  %v562_v1 = vld [vmem:[%s2428_s0 + $0x30] sm:$0xff] }
 0x188   :  { %545 = vst.msk [vmem:[#allocation2 + $0x28] sm:$0xff] %vm25_vm0, %v1861_v9  ;;  %v340_v57 = vpop.xlane.xlu0 %339  ;;  %v342_v58 = vpop.xlane.xlu1 %341 }
 0x189   :  { %v1880_v18 = vmax.f32 %v1863_v10, %v340_v57  ;;  %v1883_v7 = vmax.f32 %v1865_v17, %v342_v58  ;;  %v563_v57 = vld [vmem:[%s2428_s0 + $0x38] sm:$0xff]  ;;  %v565_v58 = vld [vmem:[%s2428_s0 + $0x48] sm:$0xff] }
 0x18b   :  { %2452 = vst [vmem:[#allocation14_spill] sm:$0xff] %v1880_v18  ;;  %2453 = vst [vmem:[#allocation15_spill] sm:$0xff] %v1883_v7  ;;  %433 = vperm.xlu1 %1399, %v1858_v2   ;;  %589 = vperm.xlu0 %1400, %v561_v15   ;;  %v569_v15 = vld [vmem:[%s2428_s0 + $0x68] sm:$0xff] }
 0x18c   :  { %552 = vst.msk [vmem:[#allocation2 + $0x60] sm:$0xff] %vm25_vm0, %v1880_v18  ;;  %553 = vst.msk [vmem:[#allocation2 + $0x68] sm:$0xff] %vm25_vm0, %v1883_v7 }
 0x18f   :  { %473 = vperm.xlu1 %1399, %v1880_v18   ;;  %595 = vperm.xlu0 %1400, %v563_v57   ;;  %v558_v57 = vld [vmem:[%s2428_s0 + $0x10] sm:$0xff] }
 0x193   :  { %448 = vperm.xlu1 %1399, %v1819_v12   ;;  %601 = vperm.xlu0 %1400, %v565_v58   ;;  %v571_v58 = vld [vmem:[%s2428_s0 + $0x78] sm:$0xff] }
 0x197   :  { %607 = vperm.xlu0 %1400, %v567_v49   ;;  %438 = vperm.xlu1 %1399, %v1861_v9   ;;  %v560_v49 = vld [vmem:[%s2428_s0 + $0x20] sm:$0xff] }
 0x19b   :  { %613 = vperm.xlu0 %1400, %v569_v15   ;;  %580 = vperm.xlu1 %1399, %v558_v57   ;;  %v564_v15 = vld [vmem:[%s2428_s0 + $0x40] sm:$0xff]  ;;  %v566_v57 = vld [vmem:[%s2428_s0 + $0x50] sm:$0xff] }
 0x19f   :  { %619 = vperm.xlu0 %1400, %v571_v58   ;;  %586 = vperm.xlu1 %1399, %v560_v49   ;;  %v568_v58 = vld [vmem:[%s2428_s0 + $0x60] sm:$0xff]  ;;  %v841_v49 = vlaneseq }
 0x1a1   :  { %v1934_v63 = vshrl.u32 %v841_v49, 7  ;;  %v1936_v50 = vand.u32 127, %v841_v49 }
 0x1a3   :  { %592 = vperm.xlu1 %1399, %v562_v1   ;;  %478 = vperm.xlu0 %1400, %v1883_v7   ;;  %v570_v1 = vld [vmem:[%s2428_s0 + $0x70] sm:$0xff]  ;;  %vm860_vm2 = vcmp.ne.s32.totalorder %v1934_v63, %v1936_v50  ;;  %v845_v18 = vadd.s32 24, %v1934_v63  ;;  %v2005_v17 = vadd.s32 88, %v1934_v63 }
 0x1a5   :  { %vm863_vm7 = vcmp.ne.s32.totalorder %v845_v18, %v1936_v50  ;;  %vm871_vm13 = vcmp.ne.s32.totalorder %v2005_v17, %v1936_v50 }
 0x1a7   :  { %598 = vperm.xlu1 %1399, %v564_v15   ;;  %v1941_v15 = vld [vmem:[%s2429_s1] ss:$0 sm:$0xff] }
 0x1a8   :  { %vm625_vm1 = vcmp.eq.s32.totalorder %v1728_v37, %v1941_v15  ;;  %vm626_vm4 = vcmp.eq.s32.totalorder %v1730_v38, %v1941_v15 }
 0x1a9   :  { %vm1004_vm3 = vmand %vm625_vm1, %vm860_vm2 }
 0x1ab   :  { %604 = vperm.xlu1 %1399, %v566_v57   ;;  %v1020_v57 = vsel %vm1004_vm3, %v1654_v22, 0.0 }
 0x1af   :  { %610 = vperm.xlu1 %1399, %v568_v58   ;;  %v1952_v58 = vadd.s32 8, %v1934_v63 }
 0x1b1   :  { %vm861_vm5 = vcmp.ne.s32.totalorder %v1952_v58, %v1936_v50 }
 0x1b2   :  { %vm1005_vm6 = vmand %vm626_vm4, %vm861_vm5 }
 0x1b3   :  { %616 = vperm.xlu1 %1399, %v570_v1   ;;  %v1021_v37 = vsel %vm1005_vm6, %v1664_v26, 0.0 }
 0x1c2   :  { %1036 = vadd.xlane.f32.xlu0 %v1020_v57 }
 0x1d7   :  { %1038 = vadd.xlane.f32.xlu1 %v1021_v37 }
 0x1ea   :  { %v424_v1 = vpop.permute.xlu1 %423 }
 0x1ee   :  { %v414_v49 = vpop.permute.xlu0 %413  ;;  %v464_v47 = vpop.permute.xlu1 %463 }
 0x1ef   :  { %v491_v48 = vsub.f32 %v1654_v22, %v414_v49 }
 0x1f1   :  { %v507_v38 = vmul.f32 1.442695, %v491_v48  ;;  %v1975_v48 = vadd.s32 40, %v1934_v63 }
 0x1f2   :  { %v1962_v57 = vpop.permute.xlu1 %453  ;;  %v469_v16 = vpop.permute.xlu0 %468 }
 0x1f3   :  { %1417 = vpow2.f32 %v507_v38  ;;  %v502_v37 = vsub.f32 %v1660_v25, %v469_v16  ;;  %vm865_vm10 = vcmp.ne.s32.totalorder %v1975_v48, %v1936_v50  ;;  %v493_v38 = vsub.f32 %v1648_v20, %v424_v1 }
 0x1f4   :  { %v2099_v48 = vadd.s32 112, %v1934_v63 }
 0x1f5   :  { %v529_v19 = vmul.f32 1.442695, %v502_v37 }
 0x1f6   :  { %v429_v8 = vpop.permute.xlu1 %428  ;;  %v459_v56 = vpop.permute.xlu0 %458 }
 0x1f7   :  { %v494_v0 = vsub.f32 %v1658_v24, %v429_v8  ;;  %v500_v22 = vsub.f32 %v1666_v27, %v459_v56 }
 0x1f9   :  { %v513_v10 = vmul.f32 1.442695, %v494_v0  ;;  %v525_v0 = vmul.f32 1.442695, %v500_v22 }
 0x1fa   :  { %v1966_v55 = vpop.permute.xlu1 %418 }
 0x1fb   :  { %1419 = vpow2.f32 %v513_v10 }
 0x1fc   :  { %1421 = vpow2.f32 %v529_v19 }
 0x1fd   :  { %1423 = vpow2.f32 %v525_v0 }
 0x1fe   :  { %v489_v2 = vpop.permute.xlu0 %488  ;;  %v1970_v41 = vpop.permute.xlu1 %443 }
 0x200   :  { %v1418_v37 = vpop.eup %1417 }
 0x201   :  { %v908_v1 = vsel %vm860_vm2, %v1418_v37, 0.0 }
 0x202   :  { %v584_v8 = vpop.permute.xlu0 %583  ;;  %v1977_v49 = vpop.permute.xlu1 %483 }
 0x203   :  { %vm628_vm8 = vcmp.eq.s32.totalorder %v584_v8, %v1941_v15  ;;  %v511_v8 = vmul.f32 1.442695, %v493_v38 }
 0x204   :  { %vm1007_vm9 = vmand %vm628_vm8, %vm863_vm7 }
 0x205   :  { %v1023_v16 = vsel %vm1007_vm9, %v1658_v24, 0.0  ;;  %1425 = vpow2.f32 %v511_v8 }
 0x206   :  { %v590_v56 = vpop.permute.xlu0 %589  ;;  %1042 = vadd.xlane.f32.xlu1 %v1023_v16  ;;  %v1985_v10 = vpop.permute.xlu1 %433  ;;  %v501_v16 = vsub.f32 %v1650_v21, %v464_v47  ;;  %v499_v47 = vsub.f32 %v1656_v23, %v1962_v57  ;;  %v844_v57 = vadd.s32 16, %v1934_v63 }
 0x207   :  { %vm630_vm11 = vcmp.eq.s32.totalorder %v590_v56, %v1941_v15  ;;  %v506_v56 = vsub.f32 %v1684_v33, %v489_v2 }
 0x208   :  { %vm1009_vm12 = vmand %vm630_vm11, %vm865_vm10  ;;  %v1420_v13 = vpop.eup %1419  ;;  %v527_v38 = vmul.f32 1.442695, %v501_v16  ;;  %v523_v16 = vmul.f32 1.442695, %v499_v47  ;;  %vm862_vm1 = vcmp.ne.s32.totalorder %v844_v57, %v1936_v50  ;;  %v2074_v57 = vadd.s32 64, %v1934_v63 }
 0x209   :  { %v1025_v19 = vsel %vm1009_vm12, %v1688_v34, 0.0  ;;  %v537_v2 = vmul.f32 1.442695, %v506_v56  ;;  %v911_v37 = vsel %vm863_vm7, %v1420_v13, 0.0  ;;  %v1422_v5 = vpop.eup %1421  ;;  %v492_v13 = vsub.f32 %v1664_v26, %v1966_v55 }
 0x20a   :  { %v1993_v24 = vpop.permute.xlu0 %595  ;;  %1046 = vadd.xlane.f32.xlu1 %v1025_v19  ;;  %v1995_v22 = vpop.permute.xlu1 %473  ;;  %v919_v56 = vsel %vm871_vm13, %v1422_v5, 0.0  ;;  %v2033_v26 = vadd.s32 32, %v1934_v63  ;;  %vm868_vm11 = vcmp.ne.s32.totalorder %v2074_v57, %v1936_v50 }
 0x20b   :  { %v509_v55 = vmul.f32 1.442695, %v492_v13  ;;  %vm632_vm12 = vcmp.eq.s32.totalorder %v1993_v24, %v1941_v15 }
 0x20c   :  { %vm864_vm4 = vcmp.ne.s32.totalorder %v2033_v26, %v1936_v50 }
 0x20e   :  { %v2002_v7 = vpop.permute.xlu0 %601  ;;  %924 = vadd.xlane.f32.xlu1 %v908_v1  ;;  %v449_v0 = vpop.permute.xlu1 %448 }
 0x20f   :  { %v498_v19 = vsub.f32 %v1678_v31, %v449_v0  ;;  %v2017_v0 = vadd.s32 72, %v1934_v63 }
 0x211   :  { %v521_v11 = vmul.f32 1.442695, %v498_v19  ;;  %v1424_v19 = vpop.eup %1423  ;;  %vm869_vm14 = vcmp.ne.s32.totalorder %v2017_v0, %v1936_v50 }
 0x212   :  { %v2012_v3 = vpop.permute.xlu0 %607  ;;  %930 = vadd.xlane.f32.xlu1 %v911_v37  ;;  %v439_v1 = vpop.permute.xlu1 %438  ;;  %v917_v5 = vsel %vm869_vm14, %v1424_v19, 0.0 }
 0x213   :  { %1427 = vpow2.f32 %v521_v11  ;;  %v496_v8 = vsub.f32 %v1688_v34, %v439_v1  ;;  %v497_v34 = vsub.f32 %v1668_v28, %v1970_v41  ;;  %v849_v1 = vadd.s32 56, %v1934_v63 }
 0x214   :  { %1429 = vpow2.f32 %v527_v38 }
 0x215   :  { %1431 = vpow2.f32 %v537_v2  ;;  %v517_v18 = vmul.f32 1.442695, %v496_v8  ;;  %v519_v41 = vmul.f32 1.442695, %v497_v34  ;;  %v2053_v8 = vadd.s32 80, %v1934_v63 }
 0x216   :  { %v2026_v37 = vpop.permute.xlu0 %613  ;;  %946 = vadd.xlane.f32.xlu1 %v919_v56  ;;  %v581_v11 = vpop.permute.xlu1 %580  ;;  %1433 = vpow2.f32 %v523_v16  ;;  %v505_v16 = vsub.f32 %v1674_v30, %v1977_v49  ;;  %v2059_v56 = vadd.s32 120, %v1934_v63  ;;  %vm867_vm7 = vcmp.ne.s32.totalorder %v849_v1, %v1936_v50 }
 0x217   :  { %vm627_vm15 = vcmp.eq.s32.totalorder %v581_v11, %v1941_v15  ;;  %1435 = vpow2.f32 %v517_v18  ;;  %vm870_vm8 = vcmp.ne.s32.totalorder %v2053_v8, %v1936_v50  ;;  %v854_v1 = vadd.s32 96, %v1934_v63  ;;  %v989_v8 = vld [vmem:[#allocation4 + $0x8] sm:$0xff] }
 0x218   :  { %vm1006_vm2 = vmand %vm627_vm15, %vm862_vm1  ;;  %1437 = vpow2.f32 %v509_v55  ;;  %v535_v55 = vmul.f32 1.442695, %v505_v16  ;;  %vm875_vm9 = vcmp.ne.s32.totalorder %v2059_v56, %v1936_v50 }
 0x219   :  { %v1022_v38 = vsel %vm1006_vm2, %v1648_v20, 0.0  ;;  %v1426_v20 = vpop.eup %1425  ;;  %1439 = vpow2.f32 %v519_v41  ;;  %vm634_vm2 = vcmp.eq.s32.totalorder %v2002_v7, %v1941_v15 }
 0x21a   :  { %v2043_v47 = vpop.permute.xlu0 %619  ;;  %942 = vadd.xlane.f32.xlu1 %v917_v5  ;;  %1040 = vadd.xlane.f32.xlu0 %v1022_v38  ;;  %v587_v2 = vpop.permute.xlu1 %586  ;;  %v910_v34 = vsel %vm862_vm1, %v1426_v20, 0.0  ;;  %v495_v5 = vsub.f32 %v1672_v29, %v1985_v10  ;;  %v503_v10 = vsub.f32 %v1680_v32, %v1995_v22  ;;  %vm874_vm1 = vcmp.ne.s32.totalorder %v2099_v48, %v1936_v50 }
 0x21b   :  { %vm629_vm3 = vcmp.eq.s32.totalorder %v587_v2, %v1941_v15 }
 0x21c   :  { %vm1008_vm6 = vmand %vm629_vm3, %vm864_vm4 }
 0x21d   :  { %v1024_v13 = vsel %vm1008_vm6, %v1672_v29, 0.0  ;;  %v515_v29 = vmul.f32 1.442695, %v495_v5  ;;  %vm1013_vm3 = vmand %vm634_vm2, %vm869_vm14  ;;  %vm636_vm6 = vcmp.eq.s32.totalorder %v2012_v3, %v1941_v15  ;;  %vm640_vm2 = vcmp.eq.s32.totalorder %v2043_v47, %v1941_v15  ;;  %v988_v47 = vld [vmem:[#allocation4] sm:$0xff] }
 0x21e   :  { %v479_v18 = vpop.permute.xlu0 %478  ;;  %1044 = vadd.xlane.f32.xlu0 %v1024_v13  ;;  %v1029_v7 = vsel %vm1013_vm3, %v1666_v27, 0.0  ;;  %vm1015_vm14 = vmand %vm636_vm6, %vm871_vm13 }
 0x21f   :  { %v504_v19 = vsub.f32 %v1724_v36, %v479_v18  ;;  %v1031_v27 = vsel %vm1015_vm14, %v1660_v25, 0.0  ;;  %vm1019_vm6 = vmand %vm640_vm2, %vm875_vm9 }
 0x220   :  { %v1428_v11 = vpop.eup %1427 }
 0x221   :  { %v1430_v49 = vpop.eup %1429  ;;  %v533_v38 = vmul.f32 1.442695, %v504_v19  ;;  %v915_v2 = vsel %vm867_vm7, %v1428_v11, 0.0  ;;  %v531_v19 = vmul.f32 1.442695, %v503_v10 }
 0x222   :  { %v1432_v13 = vpop.eup %1431  ;;  %938 = vadd.xlane.f32.xlu1 %v915_v2  ;;  %928 = vadd.xlane.f32.xlu0 %v910_v34  ;;  %v918_v41 = vsel %vm870_vm8, %v1430_v49, 0.0  ;;  %v848_v49 = vadd.s32 48, %v1934_v63 }
 0x223   :  { %1441 = vpow2.f32 %v533_v38  ;;  %v1434_v20 = vpop.eup %1433  ;;  %v923_v16 = vsel %vm875_vm9, %v1432_v13, 0.0  ;;  %v593_v13 = vpop.permute.xlu1 %592 }
 0x224   :  { %1443 = vpow2.f32 %v535_v55  ;;  %v1436_v18 = vpop.eup %1435  ;;  %v916_v22 = vsel %vm868_vm11, %v1434_v20, 0.0  ;;  %v855_v55 = vadd.s32 104, %v1934_v63 }
 0x225   :  { %1445 = vpow2.f32 %v515_v29  ;;  %v913_v11 = vsel %vm865_vm10, %v1436_v18, 0.0  ;;  %v1438_v34 = vpop.eup %1437  ;;  %vm866_vm10 = vcmp.ne.s32.totalorder %v848_v49, %v1936_v50  ;;  %v2457_v49 = vsub.f32 %v1783_v62, %v1799_v4 }
 0x226   :  { %954 = vadd.xlane.f32.xlu1 %v923_v16  ;;  %944 = vadd.xlane.f32.xlu0 %v918_v41  ;;  %v1440_v5 = vpop.eup %1439  ;;  %1447 = vpow2.f32 %v531_v19  ;;  %v909_v38 = vsel %vm861_vm5, %v1438_v34, 0.0  ;;  %vm873_vm15 = vcmp.ne.s32.totalorder %v855_v55, %v1936_v50  ;;  %vm1011_vm5 = vmand %vm632_vm12, %vm867_vm7  ;;  %vm638_vm7 = vcmp.eq.s32.totalorder %v2026_v37, %v1941_v15  ;;  %v991_v34 = vld [vmem:[#allocation4 + $0x18] sm:$0xff] }
 0x227   :  { %v914_v58 = vsel %vm866_vm10, %v1440_v5, 0.0  ;;  %v1027_v24 = vsel %vm1011_vm5, %v1678_v31, 0.0  ;;  %v599_v16 = vpop.permute.xlu1 %598  ;;  %vm872_vm12 = vcmp.ne.s32.totalorder %v854_v1, %v1936_v50  ;;  %vm631_vm5 = vcmp.eq.s32.totalorder %v593_v13, %v1941_v15 }
 0x228   :  { %vm1010_vm13 = vmand %vm631_vm5, %vm866_vm10  ;;  %vm633_vm3 = vcmp.eq.s32.totalorder %v599_v16, %v1941_v15  ;;  %v1035_v37 = vsel %vm1019_vm6, %v1684_v33, 0.0  ;;  %v2456_v50 = vsub.f32 %v1763_v54, %v1779_v60  ;;  %v397_v55 = vmul.f32 1.442695, %v2457_v49  ;;  %v887_v16 = vld [vmem:[#allocation3 + $0x58] sm:$0xff]  ;;  %v2473_v49 = vld [vmem:[#allocation9_spill] sm:$0xff] }
 0x229   :  { %v1026_v25 = vsel %vm1010_vm13, %v1668_v28, 0.0  ;;  %v2458_v54 = vsub.f32 %v1734_v40, %v1740_v44  ;;  %v2461_v40 = vsub.f32 %v1823_v14, %v1838_v35  ;;  %v2462_v1 = vsub.f32 %v1761_v53, %v1776_v59 }
 0x22a   :  { %934 = vadd.xlane.f32.xlu1 %v913_v11  ;;  %940 = vadd.xlane.f32.xlu0 %v916_v22 }
 0x22b   :  { %v605_v63 = vpop.permute.xlu1 %604  ;;  %v383_v60 = vmul.f32 1.442695, %v2458_v54  ;;  %v409_v44 = vmul.f32 1.442695, %v2461_v40  ;;  %v2478_v40 = vld [vmem:[#allocation12_spill] sm:$0xff] }
 0x22e   :  { %926 = vadd.xlane.f32.xlu0 %v909_v38 }
 0x22f   :  { %v611_v0 = vpop.permute.xlu1 %610 }
 0x230   :  { %v1442_v2 = vpop.eup %1441  ;;  %vm637_vm9 = vcmp.eq.s32.totalorder %v611_v0, %v1941_v15 }
 0x231   :  { %v921_v41 = vsel %vm873_vm15, %v1442_v2, 0.0  ;;  %v1444_v20 = vpop.eup %1443  ;;  %v2459_v2 = vsub.f32 %v1803_v6, %v1819_v12 }
 0x232   :  { %950 = vadd.xlane.f32.xlu1 %v921_v41  ;;  %936 = vadd.xlane.f32.xlu0 %v914_v58  ;;  %v922_v29 = vsel %vm874_vm1, %v1444_v20, 0.0  ;;  %v1446_v10 = vpop.eup %1445  ;;  %v879_v58 = vld [vmem:[#allocation3 + $0x18] sm:$0xff] }
 0x233   :  { %v912_v31 = vsel %vm864_vm4, %v1446_v10, 0.0  ;;  %v1448_v18 = vpop.eup %1447  ;;  %vm1017_vm4 = vmand %vm638_vm7, %vm873_vm15  ;;  %vm635_vm7 = vcmp.eq.s32.totalorder %v605_v63, %v1941_v15  ;;  %v617_v28 = vpop.permute.xlu1 %616  ;;  %v393_v13 = vmul.f32 1.442695, %v2459_v2  ;;  %v885_v63 = vld [vmem:[#allocation3 + $0x48] sm:$0xff]  ;;  %v891_v2 = vld [vmem:[#allocation3 + $0x78] sm:$0xff] }
 0x234   :  { %v920_v3 = vsel %vm872_vm12, %v1448_v18, 0.0  ;;  %v1033_v17 = vsel %vm1017_vm4, %v1724_v36, 0.0  ;;  %vm1012_vm15 = vmand %vm633_vm3, %vm868_vm11  ;;  %vm639_vm14 = vcmp.eq.s32.totalorder %v617_v28, %v1941_v15  ;;  %v2454_v15 = vsub.f32 %v1742_v45, %v1756_v51  ;;  %v993_v45 = vld [vmem:[#allocation4 + $0x28] sm:$0xff] }
 0x235   :  { %v1028_v26 = vsel %vm1012_vm15, %v1656_v23, 0.0  ;;  %vm1014_vm10 = vmand %vm635_vm7, %vm870_vm8 }
 0x236   :  { %1050 = vadd.xlane.f32.xlu1 %v1027_v24  ;;  %952 = vadd.xlane.f32.xlu0 %v922_v29  ;;  %v1030_v36 = vsel %vm1014_vm10, %v1650_v21, 0.0  ;;  %vm1016_vm11 = vmand %vm637_vm9, %vm872_vm12  ;;  %v379_v11 = vmul.f32 1.442695, %v2454_v15  ;;  %v2460_v24 = vsub.f32 %v1732_v39, %v1737_v43  ;;  %v2463_v39 = vsub.f32 %v1842_v42, %v1861_v9 }
 0x237   :  { %v1032_v56 = vsel %vm1016_vm11, %v1680_v32, 0.0  ;;  %vm1018_vm8 = vmand %vm639_vm14, %vm874_vm1  ;;  %v2455_v32 = vsub.f32 %v1744_v46, %v1759_v52  ;;  %v876_v52 = vld [vmem:[#allocation3] sm:$0xff] }
 0x238   :  { %v1034_v21 = vsel %vm1018_vm8, %v1674_v30, 0.0  ;;  %1449 = vpow2.f32 %v379_v11  ;;  %v401_v30 = vmul.f32 1.442695, %v2456_v50  ;;  %v399_v29 = vmul.f32 1.442695, %v2460_v24  ;;  %v1103_v11 = vld [vmem:[%s2430_s2] sm:$0xff] }
 0x239   :  { %v385_v22 = vmul.f32 1.442695, %v2455_v32  ;;  %v389_v43 = vmul.f32 1.442695, %v2463_v39  ;;  %v883_v50 = vld [vmem:[#allocation3 + $0x38] sm:$0xff]  ;;  %v884_v39 = vld [vmem:[#allocation3 + $0x40] sm:$0xff] }
 0x23a   :  { %1054 = vadd.xlane.f32.xlu1 %v1029_v7  ;;  %932 = vadd.xlane.f32.xlu0 %v912_v31  ;;  %v395_v7 = vmul.f32 1.442695, %v2462_v1 }
 0x23b   :  { %1451 = vpow2.f32 %v385_v22  ;;  %v878_v22 = vld [vmem:[#allocation3 + $0x10] sm:$0xff] }
 0x23c   :  { %1453 = vpow2.f32 %v401_v30 }
 0x23d   :  { %1455 = vpow2.f32 %v397_v55 }
 0x23e   :  { %1058 = vadd.xlane.f32.xlu1 %v1031_v27  ;;  %948 = vadd.xlane.f32.xlu0 %v920_v3  ;;  %1457 = vpow2.f32 %v383_v60  ;;  %v2464_v3 = vld [vmem:[#allocation5_spill] sm:$0xff]  ;;  %v886_v60 = vld [vmem:[#allocation3 + $0x50] sm:$0xff] }
 0x23f   :  { %1459 = vpow2.f32 %v393_v13 }
 0x240   :  { %1461 = vpow2.f32 %v399_v29 }
 0x241   :  { %1463 = vpow2.f32 %v409_v44  ;;  %v2479_v44 = vld [vmem:[#allocation14_spill] sm:$0xff] }
 0x242   :  { %1062 = vadd.xlane.f32.xlu1 %v1033_v17  ;;  %1048 = vadd.xlane.f32.xlu0 %v1026_v25  ;;  %1465 = vpow2.f32 %v395_v7  ;;  %v2465_v17 = vsub.f32 %v1781_v61, %v2464_v3  ;;  %v990_v25 = vld [vmem:[#allocation4 + $0x10] sm:$0xff] }
 0x243   :  { %1467 = vpow2.f32 %v389_v43  ;;  %v881_v43 = vld [vmem:[#allocation3 + $0x28] sm:$0xff] }
 0x244   :  { %v381_v53 = vmul.f32 1.442695, %v2465_v17 }
 0x245   :  { %v1450_v51 = vpop.eup %1449 }
 0x246   :  { %1066 = vadd.xlane.f32.xlu1 %v1035_v37  ;;  %1052 = vadd.xlane.f32.xlu0 %v1028_v26  ;;  %v892_v62 = vmul.f32 %v1450_v51, %v876_v52  ;;  %v2466_v37 = vld [vmem:[#allocation6_spill] sm:$0xff]  ;;  %v2467_v26 = vld [vmem:[#allocation7_spill] sm:$0xff]  ;;  %v2227_v52 = vld [vmem:[%s2430_s2 + $0x18] sm:$0xff] }
 0x247   :  { %v2468_v28 = vsub.f32 %v2466_v37, %v2467_v26  ;;  %v877_v37 = vld [vmem:[#allocation3 + $0x8] sm:$0xff]  ;;  %v1122_v26 = vld [vmem:[#allocation2 + $0x18] sm:$0xff] }
 0x248   :  { %v1452_v4 = vpop.eup %1451 }
 0x249   :  { %v895_v6 = vmul.f32 %v1452_v4, %v879_v58  ;;  %v1454_v12 = vpop.eup %1453  ;;  %v2476_v58 = vld [vmem:[#allocation11_spill] sm:$0xff] }
 0x24a   :  { %1056 = vadd.xlane.f32.xlu0 %v1030_v36  ;;  %v903_v14 = vmul.f32 %v1454_v12, %v887_v16  ;;  %v1456_v35 = vpop.eup %1455  ;;  %v391_v36 = vmul.f32 1.442695, %v2468_v28 }
 0x24b   :  { %v1037_v33 = vpop.xlane.xlu0 %1036  ;;  %v901_v42 = vmul.f32 %v1456_v35, %v885_v63 }
 0x24c   :  { %v1068_v23 = vadd.f32 %v1037_v33, %v988_v47 }
 0x24e   :  { %1084 = vst.msk [vmem:[#allocation4] sm:$0xff] %vm25_vm0, %v1068_v23  ;;  %1060 = vadd.xlane.f32.xlu0 %v1032_v56  ;;  %v2469_v23 = vld [vmem:[#allocation13_spill] sm:$0xff]  ;;  %v2470_v56 = vld [vmem:[#allocation15_spill] sm:$0xff] }
 0x24f   :  { %v2471_v61 = vsub.f32 %v2469_v23, %v2470_v56 }
 0x252   :  { %1064 = vadd.xlane.f32.xlu0 %v1034_v21  ;;  %v405_v21 = vmul.f32 1.442695, %v2471_v61 }
 0x255   :  { %v1199_v56 = vld [vmem:[#allocation4] sm:$0xff] }
 0x260   :  { %v1039_v57 = vpop.xlane.xlu1 %1038 }
 0x261   :  { %v1069_v19 = vadd.f32 %v1039_v57, %v989_v8  ;;  %v992_v57 = vld [vmem:[#allocation4 + $0x20] sm:$0xff] }
 0x263   :  { %1085 = vst.msk [vmem:[#allocation4 + $0x8] sm:$0xff] %vm25_vm0, %v1069_v19  ;;  %v1458_v19 = vpop.eup %1457 }
 0x264   :  { %v1460_v15 = vpop.eup %1459 }
 0x265   :  { %v899_v51 = vmul.f32 %v1460_v15, %v883_v50 }
 0x28f   :  { %v1043_v5 = vpop.xlane.xlu1 %1042 }
 0x290   :  { %v1071_v38 = vadd.f32 %v1043_v5, %v991_v34  ;;  %v2472_v34 = vld [vmem:[#allocation8_spill] sm:$0xff] }
 0x291   :  { %v2474_v55 = vsub.f32 %v2472_v34, %v2473_v49 }
 0x292   :  { %1087 = vst.msk [vmem:[#allocation4 + $0x18] sm:$0xff] %vm25_vm0, %v1071_v38  ;;  %v1462_v38 = vpop.eup %1461 }
 0x293   :  { %v1047_v46 = vpop.xlane.xlu1 %1046  ;;  %v407_v5 = vmul.f32 1.442695, %v2474_v55 }
 0x294   :  { %v1073_v48 = vadd.f32 %v1047_v46, %v993_v45  ;;  %v894_v45 = vmul.f32 %v1458_v19, %v878_v22  ;;  %v1464_v46 = vpop.eup %1463 }
 0x295   :  { %v1466_v4 = vpop.eup %1465  ;;  %v907_v16 = vmul.f32 %v1464_v46, %v891_v2 }
 0x296   :  { %1089 = vst.msk [vmem:[#allocation4 + $0x28] sm:$0xff] %vm25_vm0, %v1073_v48  ;;  %v1468_v29 = vpop.eup %1467 }
 0x297   :  { %v925_v41 = vpop.xlane.xlu1 %924 }
 0x298   :  { %v956_v20 = vadd.f32 %v925_v41, %v892_v62  ;;  %v2475_v41 = vld [vmem:[#allocation10_spill] sm:$0xff] }
 0x29a   :  { %972 = vst.msk [vmem:[#allocation3] sm:$0xff] %vm25_vm0, %v956_v20  ;;  %v2477_v20 = vsub.f32 %v2475_v41, %v2476_v58 }
 0x29b   :  { %v931_v10 = vpop.xlane.xlu1 %930 }
 0x29c   :  { %v959_v31 = vadd.f32 %v931_v10, %v895_v6  ;;  %v387_v24 = vmul.f32 1.442695, %v2477_v20  ;;  %v2480_v6 = vsub.f32 %v2478_v40, %v2479_v44  ;;  %v902_v10 = vmul.f32 %v1462_v38, %v886_v60  ;;  %v1202_v38 = vld [vmem:[#allocation4 + $0x18] sm:$0xff] }
 0x29d   :  { %v995_v40 = vld [vmem:[#allocation4 + $0x38] sm:$0xff] }
 0x29e   :  { %975 = vst.msk [vmem:[#allocation3 + $0x18] sm:$0xff] %vm25_vm0, %v959_v31  ;;  %v403_v12 = vmul.f32 1.442695, %v2480_v6 }
 0x29f   :  { %v947_v18 = vpop.xlane.xlu1 %946 }
 0x2a0   :  { %v967_v27 = vadd.f32 %v947_v18, %v903_v14 }
 0x2a1   :  { %v1135_v59 = vld [vmem:[#allocation3] sm:$0xff] }
 0x2a2   :  { %1469 = vlog2.f32 %v1135_v59  ;;  %983 = vst.msk [vmem:[#allocation3 + $0x58] sm:$0xff] %vm25_vm0, %v967_v27  ;;  %v1119_v27 = vld [vmem:[#allocation2] sm:$0xff]  ;;  %v900_v59 = vmul.f32 %v1466_v4, %v884_v39  ;;  %v2264_v4 = vld [vmem:[%s2430_s2 + $0x48] sm:$0xff]  ;;  %v2277_v39 = vld [vmem:[%s2430_s2 + $0x58] sm:$0xff] }
 0x2a3   :  { %v1041_v9 = vpop.xlane.xlu0 %1040  ;;  %v943_v0 = vpop.xlane.xlu1 %942  ;;  %1471 = vpow2.f32 %v381_v53 }
 0x2a4   :  { %v1070_v47 = vadd.f32 %v1041_v9, %v990_v25  ;;  %v965_v33 = vadd.f32 %v943_v0, %v901_v42  ;;  %v897_v25 = vmul.f32 %v1468_v29, %v881_v43 }
 0x2a5   :  { %v1138_v8 = vld [vmem:[#allocation3 + $0x18] sm:$0xff] }
 0x2a6   :  { %1473 = vlog2.f32 %v1138_v8  ;;  %1086 = vst.msk [vmem:[#allocation4 + $0x10] sm:$0xff] %vm25_vm0, %v1070_v47  ;;  %981 = vst.msk [vmem:[#allocation3 + $0x48] sm:$0xff] %vm25_vm0, %v965_v33 }
 0x2a7   :  { %v1045_v32 = vpop.xlane.xlu0 %1044  ;;  %1475 = vpow2.f32 %v391_v36 }
 0x2a8   :  { %v1072_v30 = vadd.f32 %v1045_v32, %v992_v57  ;;  %1477 = vpow2.f32 %v405_v21  ;;  %v882_v32 = vld [vmem:[#allocation3 + $0x30] sm:$0xff] }
 0x2a9   :  { %1479 = vrcp.f32 %v1103_v11  ;;  %v1146_v53 = vld [vmem:[#allocation3 + $0x58] sm:$0xff] }
 0x2aa   :  { %1088 = vst.msk [vmem:[#allocation4 + $0x20] sm:$0xff] %vm25_vm0, %v1072_v30  ;;  %1481 = vpow2.f32 %v407_v5  ;;  %v889_v30 = vld [vmem:[#allocation3 + $0x68] sm:$0xff]  ;;  %v2251_v5 = vld [vmem:[%s2430_s2 + $0x38] sm:$0xff] }
 0x2ab   :  { %v929_v48 = vpop.xlane.xlu0 %928  ;;  %v939_v54 = vpop.xlane.xlu1 %938  ;;  %1483 = vrcp.f32 %v2227_v52 }
 0x2ac   :  { %v958_v13 = vadd.f32 %v929_v48, %v894_v45  ;;  %v963_v62 = vadd.f32 %v939_v54, %v899_v51  ;;  %1485 = vpow2.f32 %v387_v24  ;;  %v2257_v54 = vld [vmem:[%s2430_s2 + $0x28] sm:$0xff] }
 0x2ad   :  { %v1144_v35 = vld [vmem:[#allocation3 + $0x48] sm:$0xff]  ;;  %1487 = vpow2.f32 %v403_v12 }
 0x2ae   :  { %974 = vst.msk [vmem:[#allocation3 + $0x10] sm:$0xff] %vm25_vm0, %v958_v13  ;;  %979 = vst.msk [vmem:[#allocation3 + $0x38] sm:$0xff] %vm25_vm0, %v963_v62  ;;  %1489 = vlog2.f32 %v1144_v35  ;;  %v890_v62 = vld [vmem:[#allocation3 + $0x70] sm:$0xff] }
 0x2af   :  { %v1470_v1 = vpop.eup %1469  ;;  %v945_v7 = vpop.xlane.xlu0 %944  ;;  %1491 = vlog2.f32 %v1146_v53 }
 0x2b0   :  { %v955_v31 = vpop.xlane.xlu1 %954  ;;  %v1152_v14 = vmul.f32 0.6931472, %v1470_v1  ;;  %v966_v18 = vadd.f32 %v945_v7, %v902_v10  ;;  %v1472_v3 = vpop.eup %1471 }
 0x2b1   :  { %v971_v63 = vadd.f32 %v955_v31, %v907_v16  ;;  %v893_v15 = vmul.f32 %v1472_v3, %v877_v37  ;;  %v880_v31 = vld [vmem:[#allocation3 + $0x20] sm:$0xff]  ;;  %v1121_v37 = vld [vmem:[#allocation2 + $0x10] sm:$0xff] }
 0x2b2   :  { %v1183_v17 = vadd.f32 %v1152_v14, %v1119_v27  ;;  %982 = vst.msk [vmem:[#allocation3 + $0x50] sm:$0xff] %vm25_vm0, %v966_v18  ;;  %v997_v27 = vld [vmem:[#allocation4 + $0x48] sm:$0xff] }
 0x2b3   :  { %987 = vst.msk [vmem:[#allocation3 + $0x78] sm:$0xff] %vm25_vm0, %v971_v63  ;;  %v1474_v42 = vpop.eup %1473  ;;  %v941_v9 = vpop.xlane.xlu0 %940 }
 0x2b4   :  { %v935_v0 = vpop.xlane.xlu1 %934  ;;  %v1215_v28 = vmul.f32 %v1183_v17, %v1103_v11  ;;  %v1158_v36 = vmul.f32 0.6931472, %v1474_v42  ;;  %v964_v47 = vadd.f32 %v941_v9, %v900_v59  ;;  %v1476_v23 = vpop.eup %1475  ;;  %v2245_v11 = vld [vmem:[%s2430_s2 + $0x10] sm:$0xff]  ;;  %v2287_v17 = vld [vmem:[%s2430_s2 + $0x8] sm:$0xff]  ;;  %v888_v9 = vld [vmem:[#allocation3 + $0x60] sm:$0xff] }
 0x2b5   :  { %v961_v33 = vadd.f32 %v935_v0, %v897_v25  ;;  %v1137_v61 = vld [vmem:[#allocation3 + $0x10] sm:$0xff]  ;;  %v1142_v21 = vld [vmem:[#allocation3 + $0x38] sm:$0xff]  ;;  %v1478_v8 = vpop.eup %1477  ;;  %v898_v45 = vmul.f32 %v1476_v23, %v882_v32  ;;  %v1128_v32 = vld [vmem:[#allocation2 + $0x48] sm:$0xff] }
 0x2b6   :  { %v1231_v57 = vsub.f32 %v1199_v56, %v1215_v28  ;;  %v1186_v19 = vadd.f32 %v1158_v36, %v1122_v26  ;;  %1493 = vlog2.f32 %v1137_v61  ;;  %980 = vst.msk [vmem:[#allocation3 + $0x40] sm:$0xff] %vm25_vm0, %v964_v47  ;;  %v1480_v22 = vpop.eup %1479  ;;  %v999_v61 = vld [vmem:[#allocation4 + $0x58] sm:$0xff] }
 0x2b7   :  { %977 = vst.msk [vmem:[#allocation3 + $0x28] sm:$0xff] %vm25_vm0, %v961_v33  ;;  %1495 = vlog2.f32 %v1142_v21  ;;  %v927_v50 = vpop.xlane.xlu0 %926  ;;  %v1482_v51 = vpop.eup %1481  ;;  %v1126_v21 = vld [vmem:[#allocation2 + $0x38] sm:$0xff] }
 0x2b8   :  { %v1247_v34 = vmul.f32 -1.0, %v1231_v57  ;;  %v1218_v49 = vmul.f32 %v1186_v19, %v2227_v52  ;;  %v957_v55 = vadd.f32 %v927_v50, %v893_v15  ;;  %1497 = vrcp.f32 %v2245_v11  ;;  %v1484_v60 = vpop.eup %1483  ;;  %v2297_v19 = vld [vmem:[%s2430_s2 + $0x30] sm:$0xff] }
 0x2b9   :  { %v905_v52 = vmul.f32 %v1478_v8, %v889_v30  ;;  %1499 = vrcp.f32 %v2251_v5  ;;  %v1486_v44 = vpop.eup %1485  ;;  %v906_v10 = vmul.f32 %v1482_v51, %v890_v62  ;;  %v1145_v14 = vld [vmem:[#allocation3 + $0x50] sm:$0xff] }
 0x2ba   :  { %v1264_v46 = vmul.f32 %v1480_v22, %v1247_v34  ;;  %v1234_v48 = vsub.f32 %v1202_v38, %v1218_v49  ;;  %973 = vst.msk [vmem:[#allocation3 + $0x8] sm:$0xff] %vm25_vm0, %v957_v55  ;;  %1501 = vrcp.f32 %v2264_v4  ;;  %v1150_v12 = vld [vmem:[#allocation3 + $0x78] sm:$0xff]  ;;  %v1488_v16 = vpop.eup %1487  ;;  %v896_v53 = vmul.f32 %v1486_v44, %v880_v31  ;;  %v2302_v49 = vld [vmem:[%s2430_s2 + $0x68] sm:$0xff] }
 0x2bb   :  { %v937_v2 = vpop.xlane.xlu0 %936  ;;  %v951_v13 = vpop.xlane.xlu1 %950  ;;  %1503 = vrcp.f32 %v2257_v54  ;;  %v904_v57 = vmul.f32 %v1488_v16, %v888_v9 }
 0x2bc   :  { %1295 = vst.msk [vmem:[%s2431_s5] sm:$0xff] %vm25_vm0, %v1264_v46  ;;  %v1250_v41 = vmul.f32 -1.0, %v1234_v48  ;;  %v962_v58 = vadd.f32 %v937_v2, %v898_v45  ;;  %v969_v20 = vadd.f32 %v951_v13, %v905_v52  ;;  %v1490_v43 = vpop.eup %1489  ;;  %v994_v48 = vld [vmem:[#allocation4 + $0x30] sm:$0xff]  ;;  %v2308_v52 = vld [vmem:[%s2430_s2 + $0x40] sm:$0xff] }
 0x2bd   :  { %v1143_v24 = vld [vmem:[#allocation3 + $0x40] sm:$0xff]  ;;  %v1492_v3 = vpop.eup %1491  ;;  %v1170_v26 = vmul.f32 0.6931472, %v1490_v43  ;;  %v1201_v2 = vld [vmem:[#allocation4 + $0x10] sm:$0xff] }
 0x2be   :  { %v1140_v29 = vld [vmem:[#allocation3 + $0x28] sm:$0xff]  ;;  %v1270_v6 = vmul.f32 %v1484_v60, %v1250_v41  ;;  %1505 = vlog2.f32 %v1143_v24  ;;  %978 = vst.msk [vmem:[#allocation3 + $0x30] sm:$0xff] %vm25_vm0, %v962_v58  ;;  %985 = vst.msk [vmem:[#allocation3 + $0x68] sm:$0xff] %vm25_vm0, %v969_v20  ;;  %v1174_v22 = vmul.f32 0.6931472, %v1492_v3 }
 0x2bf   :  { %1507 = vlog2.f32 %v1140_v29  ;;  %v953_v1 = vpop.xlane.xlu0 %952  ;;  %v1051_v7 = vpop.xlane.xlu1 %1050  ;;  %v1192_v45 = vadd.f32 %v1170_v26, %v1128_v32  ;;  %v1001_v41 = vld [vmem:[#allocation4 + $0x68] sm:$0xff] }
 0x2c0   :  { %1298 = vst.msk [vmem:[%s2431_s5 + $0x18] sm:$0xff] %vm25_vm0, %v1270_v6  ;;  %v970_v35 = vadd.f32 %v953_v1, %v906_v10  ;;  %v1075_v18 = vadd.f32 %v1051_v7, %v995_v40  ;;  %1509 = vrcp.f32 %v2277_v39  ;;  %v1124_v3 = vld [vmem:[#allocation2 + $0x28] sm:$0xff] }
 0x2c1   :  { %1511 = vlog2.f32 %v1150_v12  ;;  %v1136_v63 = vld [vmem:[#allocation3 + $0x8] sm:$0xff]  ;;  %v1224_v16 = vmul.f32 %v1192_v45, %v2264_v4  ;;  %v1003_v4 = vld [vmem:[#allocation4 + $0x78] sm:$0xff] }
 0x2c2   :  { %1513 = vlog2.f32 %v1136_v63  ;;  %986 = vst.msk [vmem:[#allocation3 + $0x70] sm:$0xff] %vm25_vm0, %v970_v35  ;;  %1091 = vst.msk [vmem:[#allocation4 + $0x38] sm:$0xff] %vm25_vm0, %v1075_v18  ;;  %v996_v63 = vld [vmem:[#allocation4 + $0x40] sm:$0xff] }
 0x2c3   :  { %v1494_v59 = vpop.eup %1493  ;;  %1515 = vlog2.f32 %v1145_v14  ;;  %v933_v25 = vpop.xlane.xlu0 %932 }
 0x2c4   :  { %v1055_v42 = vpop.xlane.xlu1 %1054  ;;  %v1496_v0 = vpop.eup %1495  ;;  %v1156_v28 = vmul.f32 0.6931472, %v1494_v59  ;;  %v960_v36 = vadd.f32 %v933_v25, %v896_v53  ;;  %1517 = vrcp.f32 %v2287_v17  ;;  %v2328_v25 = vld [vmem:[%s2430_s2 + $0x78] sm:$0xff] }
 0x2c5   :  { %v1077_v47 = vadd.f32 %v1055_v42, %v997_v27  ;;  %v1166_v33 = vmul.f32 0.6931472, %v1496_v0  ;;  %v1141_v23 = vld [vmem:[#allocation3 + $0x30] sm:$0xff]  ;;  %v1148_v56 = vld [vmem:[#allocation3 + $0x68] sm:$0xff]  ;;  %v1498_v15 = vpop.eup %1497 }
 0x2c6   :  { %v1185_v8 = vadd.f32 %v1156_v28, %v1121_v37  ;;  %1519 = vlog2.f32 %v1141_v23  ;;  %976 = vst.msk [vmem:[#allocation3 + $0x20] sm:$0xff] %vm25_vm0, %v960_v36  ;;  %v1500_v55 = vpop.eup %1499 }
 0x2c7   :  { %1093 = vst.msk [vmem:[#allocation4 + $0x48] sm:$0xff] %vm25_vm0, %v1077_v47  ;;  %1521 = vlog2.f32 %v1148_v56  ;;  %v1190_v50 = vadd.f32 %v1166_v33, %v1126_v21  ;;  %v949_v30 = vpop.xlane.xlu0 %948  ;;  %v2310_v60 = vpop.eup %1501  ;;  %v1120_v47 = vld [vmem:[#allocation2 + $0x8] sm:$0xff]  ;;  %v2339_v21 = vld [vmem:[%s2430_s2 + $0x50] sm:$0xff] }
 0x2c8   :  { %v1059_v34 = vpop.xlane.xlu1 %1058  ;;  %v1217_v38 = vmul.f32 %v1185_v8, %v2245_v11  ;;  %v968_v51 = vadd.f32 %v949_v30, %v904_v57  ;;  %1523 = vrcp.f32 %v2297_v19  ;;  %v2314_v58 = vpop.eup %1503  ;;  %v1130_v11 = vld [vmem:[#allocation2 + $0x58] sm:$0xff]  ;;  %v1127_v30 = vld [vmem:[#allocation2 + $0x40] sm:$0xff] }
 0x2c9   :  { %v1079_v46 = vadd.f32 %v1059_v34, %v999_v61  ;;  %v1222_v13 = vmul.f32 %v1190_v50, %v2251_v5  ;;  %v1206_v62 = vld [vmem:[#allocation4 + $0x38] sm:$0xff]  ;;  %v1149_v24 = vld [vmem:[#allocation3 + $0x70] sm:$0xff]  ;;  %1525 = vrcp.f32 %v2302_v49  ;;  %v1194_v44 = vadd.f32 %v1174_v22, %v1130_v11  ;;  %v1204_v34 = vld [vmem:[#allocation4 + $0x28] sm:$0xff] }
 0x2ca   :  { %v1233_v20 = vsub.f32 %v1201_v2, %v1217_v38  ;;  %984 = vst.msk [vmem:[#allocation3 + $0x60] sm:$0xff] %vm25_vm0, %v968_v51  ;;  %1527 = vrcp.f32 %v2308_v52  ;;  %v998_v50 = vld [vmem:[#allocation4 + $0x50] sm:$0xff] }
 0x2cb   :  { %1095 = vst.msk [vmem:[#allocation4 + $0x58] sm:$0xff] %vm25_vm0, %v1079_v46  ;;  %v1506_v29 = vpop.eup %1505  ;;  %v1238_v40 = vsub.f32 %v1206_v62, %v1222_v13  ;;  %v1049_v6 = vpop.xlane.xlu0 %1048  ;;  %1529 = vlog2.f32 %v1149_v24  ;;  %v1226_v56 = vmul.f32 %v1194_v44, %v2277_v39 }
 0x2cc   :  { %v1063_v5 = vpop.xlane.xlu1 %1062  ;;  %v1508_v12 = vpop.eup %1507  ;;  %v1249_v10 = vmul.f32 -1.0, %v1233_v20  ;;  %v1074_v1 = vadd.f32 %v1049_v6, %v994_v48  ;;  %v1168_v9 = vmul.f32 0.6931472, %v1506_v29  ;;  %v2352_v48 = vld [vmem:[%s2430_s2 + $0x20] sm:$0xff]  ;;  %v1125_v29 = vld [vmem:[#allocation2 + $0x30] sm:$0xff] }
 0x2cd   :  { %v1081_v7 = vadd.f32 %v1063_v5, %v1001_v41  ;;  %v2321_v31 = vpop.eup %1509  ;;  %v1162_v43 = vmul.f32 0.6931472, %v1508_v12  ;;  %v1254_v14 = vmul.f32 -1.0, %v1238_v40  ;;  %v1139_v35 = vld [vmem:[#allocation3 + $0x20] sm:$0xff]  ;;  %v1134_v41 = vld [vmem:[#allocation2 + $0x78] sm:$0xff]  ;;  %v1200_v40 = vld [vmem:[#allocation4 + $0x8] sm:$0xff] }
 0x2ce   :  { %v1208_v18 = vld [vmem:[#allocation4 + $0x48] sm:$0xff]  ;;  %v1512_v27 = vpop.eup %1511  ;;  %v1268_v53 = vmul.f32 %v1498_v15, %v1249_v10  ;;  %1531 = vlog2.f32 %v1139_v35  ;;  %1090 = vst.msk [vmem:[#allocation4 + $0x30] sm:$0xff] %vm25_vm0, %v1074_v1  ;;  %v1191_v2 = vadd.f32 %v1168_v9, %v1127_v30  ;;  %v1000_v12 = vld [vmem:[#allocation4 + $0x60] sm:$0xff] }
 0x2cf   :  { %v1240_v59 = vsub.f32 %v1208_v18, %v1224_v16  ;;  %1097 = vst.msk [vmem:[#allocation4 + $0x68] sm:$0xff] %vm25_vm0, %v1081_v7  ;;  %v1514_v42 = vpop.eup %1513  ;;  %v1188_v0 = vadd.f32 %v1162_v43, %v1124_v3  ;;  %v1278_v37 = vmul.f32 %v1500_v55, %v1254_v14  ;;  %v1053_v26 = vpop.xlane.xlu0 %1052  ;;  %1533 = vrcp.f32 %v2328_v25  ;;  %v1129_v16 = vld [vmem:[#allocation2 + $0x50] sm:$0xff]  ;;  %v1132_v1 = vld [vmem:[#allocation2 + $0x68] sm:$0xff] }
 0x2d0   :  { %v1067_v28 = vpop.xlane.xlu1 %1066  ;;  %v1516_v36 = vpop.eup %1515  ;;  %1297 = vst.msk [vmem:[%s2431_s5 + $0x10] sm:$0xff] %vm25_vm0, %v1268_v53  ;;  %v1154_v33 = vmul.f32 0.6931472, %v1514_v42  ;;  %v1076_v61 = vadd.f32 %v1053_v26, %v996_v63  ;;  %v1182_v8 = vmul.f32 0.6931472, %v1512_v27  ;;  %1535 = vrcp.f32 %v2339_v21  ;;  %v2367_v27 = vld [vmem:[%s2430_s2 + $0x60] sm:$0xff] }
 0x2d1   :  { %v1256_v23 = vmul.f32 -1.0, %v1240_v59  ;;  %v1220_v57 = vmul.f32 %v1188_v0, %v2257_v54  ;;  %1302 = vst.msk [vmem:[%s2431_s5 + $0x38] sm:$0xff] %vm25_vm0, %v1278_v37  ;;  %v1147_v15 = vld [vmem:[#allocation3 + $0x60] sm:$0xff]  ;;  %v1083_v22 = vadd.f32 %v1067_v28, %v1003_v4  ;;  %v1518_v39 = vpop.eup %1517  ;;  %v1172_v51 = vmul.f32 0.6931472, %v1516_v36  ;;  %v1117_v42 = vld [vmem:[%s2430_s2 + $0x70] sm:$0xff] }
 0x2d2   :  { %v1210_v32 = vld [vmem:[#allocation4 + $0x58] sm:$0xff]  ;;  %v1184_v55 = vadd.f32 %v1154_v33, %v1120_v47  ;;  %1537 = vlog2.f32 %v1147_v15  ;;  %1092 = vst.msk [vmem:[#allocation4 + $0x40] sm:$0xff] %vm25_vm0, %v1076_v61  ;;  %v1198_v5 = vadd.f32 %v1182_v8, %v1134_v41  ;;  %v1223_v4 = vmul.f32 %v1191_v2, %v2308_v52 }
 0x2d3   :  { %v1282_v38 = vmul.f32 %v2310_v60, %v1256_v23  ;;  %v1242_v45 = vsub.f32 %v1210_v32, %v1226_v56  ;;  %v1520_v54 = vpop.eup %1519  ;;  %v1236_v46 = vsub.f32 %v1204_v34, %v1220_v57  ;;  %1099 = vst.msk [vmem:[#allocation4 + $0x78] sm:$0xff] %vm25_vm0, %v1083_v22  ;;  %v1057_v13 = vpop.xlane.xlu0 %1056  ;;  %1539 = vrcp.f32 %v2352_v48  ;;  %v1002_v23 = vld [vmem:[#allocation4 + $0x70] sm:$0xff] }
 0x2d4   :  { %v1522_v62 = vpop.eup %1521  ;;  %v1216_v60 = vmul.f32 %v1184_v55, %v2287_v17  ;;  %v1164_v11 = vmul.f32 0.6931472, %v1520_v54  ;;  %v1078_v24 = vadd.f32 %v1057_v13, %v998_v50  ;;  %v1193_v63 = vadd.f32 %v1172_v51, %v1129_v16  ;;  %v1123_v50 = vld [vmem:[#allocation2 + $0x20] sm:$0xff] }
 0x2d5   :  { %1304 = vst.msk [vmem:[%s2431_s5 + $0x48] sm:$0xff] %vm25_vm0, %v1282_v38  ;;  %v1258_v20 = vmul.f32 -1.0, %v1242_v45  ;;  %v1252_v44 = vmul.f32 -1.0, %v1236_v46  ;;  %v1178_v6 = vmul.f32 0.6931472, %v1522_v62  ;;  %v1524_v10 = vpop.eup %1523  ;;  %v1205_v9 = vld [vmem:[#allocation4 + $0x30] sm:$0xff]  ;;  %v1230_v26 = vmul.f32 %v1198_v5, %v2328_v25 }
 0x2d6   :  { %v1232_v7 = vsub.f32 %v1200_v40, %v1216_v60  ;;  %v1189_v43 = vadd.f32 %v1164_v11, %v1125_v29  ;;  %1094 = vst.msk [vmem:[#allocation4 + $0x50] sm:$0xff] %vm25_vm0, %v1078_v24  ;;  %v1526_v14 = vpop.eup %1525  ;;  %v1212_v52 = vld [vmem:[#allocation4 + $0x68] sm:$0xff]  ;;  %1541 = vrcp.f32 %v2367_v27  ;;  %v1225_v22 = vmul.f32 %v1193_v63, %v2339_v21  ;;  %v1133_v60 = vld [vmem:[#allocation2 + $0x70] sm:$0xff]  ;;  %v1131_v24 = vld [vmem:[#allocation2 + $0x60] sm:$0xff] }
 0x2d7   :  { %v1286_v17 = vmul.f32 %v2321_v31, %v1258_v20  ;;  %v1274_v35 = vmul.f32 %v2314_v58, %v1252_v44  ;;  %v1196_v18 = vadd.f32 %v1178_v6, %v1132_v1  ;;  %v1061_v3 = vpop.xlane.xlu0 %1060  ;;  %v1528_v53 = vpop.eup %1527  ;;  %1543 = vrcp.f32 %v1117_v42  ;;  %v1203_v29 = vld [vmem:[#allocation4 + $0x20] sm:$0xff] }
 0x2d8   :  { %v1248_v59 = vmul.f32 -1.0, %v1232_v7  ;;  %v1221_v31 = vmul.f32 %v1189_v43, %v2297_v19  ;;  %v1080_v58 = vadd.f32 %v1061_v3, %v1000_v12  ;;  %v1530_v28 = vpop.eup %1529 }
 0x2d9   :  { %1306 = vst.msk [vmem:[%s2431_s5 + $0x58] sm:$0xff] %vm25_vm0, %v1286_v17  ;;  %1300 = vst.msk [vmem:[%s2431_s5 + $0x28] sm:$0xff] %vm25_vm0, %v1274_v35  ;;  %v1228_v0 = vmul.f32 %v1196_v18, %v2302_v49  ;;  %v1207_v37 = vld [vmem:[#allocation4 + $0x40] sm:$0xff] }
 0x2da   :  { %v1266_v19 = vmul.f32 %v1518_v39, %v1248_v59  ;;  %v1237_v36 = vsub.f32 %v1205_v9, %v1221_v31  ;;  %v1239_v47 = vsub.f32 %v1207_v37, %v1223_v4  ;;  %v1214_v33 = vld [vmem:[#allocation4 + $0x78] sm:$0xff]  ;;  %1096 = vst.msk [vmem:[#allocation4 + $0x60] sm:$0xff] %vm25_vm0, %v1080_v58  ;;  %v1180_v39 = vmul.f32 0.6931472, %v1530_v28 }
 0x2db   :  { %v1532_v56 = vpop.eup %1531  ;;  %v1244_v61 = vsub.f32 %v1212_v52, %v1228_v0  ;;  %v1246_v8 = vsub.f32 %v1214_v33, %v1230_v26  ;;  %v1065_v57 = vpop.xlane.xlu0 %1064 }
 0x2dc   :  { %v1534_v49 = vpop.eup %1533  ;;  %1296 = vst.msk [vmem:[%s2431_s5 + $0x8] sm:$0xff] %vm25_vm0, %v1266_v19  ;;  %v1160_v25 = vmul.f32 0.6931472, %v1532_v56  ;;  %v1253_v15 = vmul.f32 -1.0, %v1237_v36  ;;  %v1255_v32 = vmul.f32 -1.0, %v1239_v47  ;;  %v1082_v38 = vadd.f32 %v1065_v57, %v1002_v23 }
 0x2dd   :  { %v1260_v30 = vmul.f32 -1.0, %v1244_v61  ;;  %v1262_v34 = vmul.f32 -1.0, %v1246_v8  ;;  %v1209_v55 = vld [vmem:[#allocation4 + $0x50] sm:$0xff]  ;;  %v1536_v45 = vpop.eup %1535 }
 0x2de   :  { %v1187_v54 = vadd.f32 %v1160_v25, %v1123_v50  ;;  %v1276_v51 = vmul.f32 %v1524_v10, %v1253_v15  ;;  %v1280_v46 = vmul.f32 %v1528_v53, %v1255_v32  ;;  %v1241_v2 = vsub.f32 %v1209_v55, %v1225_v22  ;;  %1098 = vst.msk [vmem:[#allocation4 + $0x70] sm:$0xff] %vm25_vm0, %v1082_v38 }
 0x2df   :  { %v1538_v13 = vpop.eup %1537  ;;  %v1290_v62 = vmul.f32 %v1526_v14, %v1260_v30  ;;  %v1294_v41 = vmul.f32 %v1534_v49, %v1262_v34 }
 0x2e0   :  { %v1219_v11 = vmul.f32 %v1187_v54, %v2352_v48  ;;  %v1176_v21 = vmul.f32 0.6931472, %v1538_v13  ;;  %1301 = vst.msk [vmem:[%s2431_s5 + $0x30] sm:$0xff] %vm25_vm0, %v1276_v51  ;;  %1303 = vst.msk [vmem:[%s2431_s5 + $0x40] sm:$0xff] %vm25_vm0, %v1280_v46  ;;  %v1257_v20 = vmul.f32 -1.0, %v1241_v2  ;;  %v1197_v48 = vadd.f32 %v1180_v39, %v1133_v60  ;;  %v1540_v5 = vpop.eup %1539 }
 0x2e1   :  { %1308 = vst.msk [vmem:[%s2431_s5 + $0x68] sm:$0xff] %vm25_vm0, %v1290_v62  ;;  %1310 = vst.msk [vmem:[%s2431_s5 + $0x78] sm:$0xff] %vm25_vm0, %v1294_v41  ;;  %v1211_v16 = vld [vmem:[#allocation4 + $0x60] sm:$0xff] }
 0x2e2   :  { %v1235_v40 = vsub.f32 %v1203_v29, %v1219_v11  ;;  %v1284_v44 = vmul.f32 %v1536_v45, %v1257_v20  ;;  %v1195_v6 = vadd.f32 %v1176_v21, %v1131_v24  ;;  %v1229_v1 = vmul.f32 %v1197_v48, %v1117_v42 }
 0x2e3   :  { %v1542_v14 = vpop.eup %1541 }
 0x2e4   :  { %v1251_v12 = vmul.f32 -1.0, %v1235_v40  ;;  %1305 = vst.msk [vmem:[%s2431_s5 + $0x50] sm:$0xff] %vm25_vm0, %v1284_v44  ;;  %v1227_v10 = vmul.f32 %v1195_v6, %v2367_v27  ;;  %v1544_v18 = vpop.eup %1543 }
 0x2e5   :  { %v1213_v43 = vld [vmem:[#allocation4 + $0x70] sm:$0xff] }
 0x2e6   :  { %v1272_v7 = vmul.f32 %v1540_v5, %v1251_v12  ;;  %v1243_v17 = vsub.f32 %v1211_v16, %v1227_v10  ;;  %v1245_v35 = vsub.f32 %v1213_v43, %v1229_v1 }
 0x2e8   :  { %1299 = vst.msk [vmem:[%s2431_s5 + $0x20] sm:$0xff] %vm25_vm0, %v1272_v7  ;;  %v1259_v63 = vmul.f32 -1.0, %v1243_v17  ;;  %v1261_v3 = vmul.f32 -1.0, %v1245_v35 }
 0x2ea   :  { %v1288_v53 = vmul.f32 %v1542_v14, %v1259_v63  ;;  %v1292_v59 = vmul.f32 %v1544_v18, %v1261_v3 }
 0x2ec   :  { %1307 = vst.msk [vmem:[%s2431_s5 + $0x60] sm:$0xff] %vm25_vm0, %v1288_v53  ;;  %1309 = vst.msk [vmem:[%s2431_s5 + $0x70] sm:$0xff] %vm25_vm0, %v1292_v59 }

</bundles_post_ra>
